<compile_context>
chip_gen: v7x
topology: tpu7x:2x2x1
jax: 0.10.0
libtpu: 0.0.40
codegen_flags: <defaults>
</compile_context>

<pallas_src>
import functools

import jax
import jax.numpy as jnp
from jax import lax
from jax.experimental import pallas as pl
from jax.experimental.pallas import tpu as pltpu


def _round_up(x, m):
    return (x + m - 1) // m * m


def _sim_kernel(q_ref, r_ref, inv_ref, o_ref, *, n_patch_q, patch_group):
    """One (query-tile, reference-tile) grid step.

    q_ref:   (tq*Pq, D)         flattened query patches of tq queries (bf16)
    r_ref:   (D, Pr_pad*tn)     tn references, patch-major columns (bf16)
    inv_ref: (tq, 1)            1 / non-zero-patch count per query (f32)
    o_ref:   (tq, tn)           output scores (f32)
    """
    m = q_ref.shape[0]
    tq, tn = o_ref.shape
    g = patch_group
    g_cols = g * tn
    pr_pad = r_ref.shape[1] // tn
    n_groups = pr_pad // g

    q = q_ref[...]

    def group_step(start, acc):
        # (M, D) @ (D, g*tn) on the MXU, f32 accumulation.
        sim = jnp.dot(q, r_ref[:, pl.ds(start, g_cols)],
                      preferred_element_type=jnp.float32)
        # In-group max over the g patches: static, lane-aligned slices -> pure VPU.
        grp = sim[:, 0:tn]
        for k in range(1, g):
            grp = jnp.maximum(grp, sim[:, k * tn:(k + 1) * tn])
        return jnp.maximum(acc, grp)

    maxed = jnp.full((m, tn), -jnp.inf, dtype=jnp.float32)
    if n_groups <= 16:
        # Fully static slices / unrolled for modest patch counts.
        for gi in range(n_groups):
            maxed = group_step(gi * g_cols, maxed)
    else:
        maxed = lax.fori_loop(
            0, n_groups,
            lambda gi, acc: group_step(pl.multiple_of(gi * g_cols, 128), acc),
            maxed)

    # Per-query sum over its Pq patch rows: tile-exact sublane split + reduce
    # (replaces the old quadratic 0/1 selector matmul).
    scores = jnp.sum(maxed.reshape(tq, n_patch_q, tn), axis=1)      # (tq, tn)
    o_ref[...] = jnp.clip(scores * inv_ref[...], 0.0, 1.0)


def masked_patch_matrix_similarity(query, reference, *, tile_ref=128, target_m=1024,
                                   compute_dtype=jnp.bfloat16, interpret=False):
    """query: (Nq, Pq, D); reference: (No, Nt, Pr, D) -> (Nq, No, Nt) float32."""
    n_query, n_patch_q, d = query.shape
    n_objects, n_templates, n_patch_r, d_r = reference.shape
    assert d == d_r, "feature dims must match"
    n_ref = n_objects * n_templates

    # ---- tile sizes ---------------------------------------------------------
    tn = max(128, _round_up(min(tile_ref, _round_up(n_ref, 128)), 128))
    tq = max(8, _round_up(min(n_query, max(1, target_m // n_patch_q)), 8))
    m_tile = tq * n_patch_q

    nq_pad = _round_up(n_query, tq)
    nref_pad = _round_up(n_ref, tn)
    n_blocks = nref_pad // tn

    # Reference patches per MXU matmul; bound the (M, g*tn) f32 intermediate to ~4 MiB.
    patch_group = max(1, min(n_patch_r, 4, (4 << 20) // (m_tile * tn * 4)))
    pr_pad = _round_up(n_patch_r, patch_group)

    # ---- one-time wrapper-side preprocessing --------------------------------
    # Query: flatten, zero-pad queries, bf16 for the MXU feed.
    q_flat = query.reshape(n_query * n_patch_q, d)
    if nq_pad != n_query:
        q_flat = jnp.pad(q_flat, ((0, (nq_pad - n_query) * n_patch_q), (0, 0)))
    q_flat = q_flat.astype(compute_dtype)

    # 1 / count_nonzero_p(sum_d query)  (no eps, exactly as in torch compute_similarity;
    # a fully-masked query yields inf -> NaN score, matching torch's 0/0).
    factor = jnp.sum(jnp.sum(query, axis=-1) != 0, axis=-1).astype(jnp.float32)
    inv_factor = 1.0 / factor
    inv_factor = jnp.pad(inv_factor, (0, nq_pad - n_query), constant_values=1.0)
    inv_factor = inv_factor.reshape(nq_pad, 1)

    # Reference: zero-pad the template axis, edge-replicate the patch axis (a duplicated
    # real patch never changes the max), then pre-block to (n_blocks, D, Pr_pad*tn) with
    # p-major columns so each grid step DMAs ONE contiguous slab.
    # TODO(synk): cache this relayout (and the bf16 cast) outside the call when the
    # reference/template set is static across queries.
    r = reference.reshape(n_ref, n_patch_r, d)
    if nref_pad != n_ref:
        r = jnp.pad(r, ((0, nref_pad - n_ref), (0, 0), (0, 0)))
    if pr_pad != n_patch_r:
        extra = jnp.broadcast_to(r[:, :1, :], (nref_pad, pr_pad - n_patch_r, d))
        r = jnp.concatenate([r, extra], axis=1)
    r_blk = (r.reshape(n_blocks, tn, pr_pad, d)
              .transpose(0, 3, 2, 1)
              .reshape(n_blocks, d, pr_pad * tn)
              .astype(compute_dtype))

    # ---- VMEM budget (double-buffered tiles + in-flight values), v7x-safe cap ----
    cd_bytes = jnp.dtype(compute_dtype).itemsize
    est = (2 * m_tile * d * cd_bytes                # query tile
           + 2 * d * pr_pad * tn * cd_bytes         # reference block
           + 2 * tq * tn * 4                        # output tile
           + 2 * tq * 128 * 4                       # inv_factor tile (lane padded)
           + m_tile * tn * 4                        # running max
           + m_tile * patch_group * tn * 4          # per-group sim intermediate
           + tq * tn * 4)                           # scores
    vmem_limit = int(min(max(2 * est, 16 * 1024 * 1024), 48 * 1024 * 1024))

    grid = (nq_pad // tq, n_blocks)
    kernel = functools.partial(_sim_kernel, n_patch_q=n_patch_q,
                               patch_group=patch_group)

    out = pl.pallas_call(
        kernel,
        out_shape=jax.ShapeDtypeStruct((nq_pad, nref_pad), jnp.float32),
        grid_spec=pltpu.PrefetchScalarGridSpec(
            num_scalar_prefetch=0,
            grid=grid,
            in_specs=[
                pl.BlockSpec((m_tile, d), lambda i, j: (i, 0)),              # query tile
                pl.BlockSpec((None, d, pr_pad * tn), lambda i, j: (j, 0, 0)),  # ref block
                pl.BlockSpec((tq, 1), lambda i, j: (i, 0)),                  # 1/factor
            ],
            out_specs=pl.BlockSpec((tq, tn), lambda i, j: (i, j)),
        ),
        compiler_params=pltpu.CompilerParams(
            dimension_semantics=("parallel", "parallel"),
            vmem_limit_bytes=vmem_limit),
        interpret=interpret,
    )(q_flat, r_blk, inv_factor)

    return out[:n_query, :n_ref].reshape(n_query, n_objects, n_templates)


def _reference_impl(query, reference):
    # Plain-JAX f32 reference of the PyTorch forward pass (compute_similarity).
    sim = jnp.einsum("qpd,otrd->qotpr", query, reference)
    max_ref = jnp.max(sim, axis=-1)                                    # (Nq,No,Nt,Pq)
    factor = jnp.sum(jnp.sum(query, axis=-1) != 0, axis=-1).astype(jnp.float32)
    scores = jnp.sum(max_ref, axis=-1) / factor[:, None, None]
    return jnp.clip(scores, 0.0, 1.0)


def _make_inputs(key, n_query, n_patch_q, n_objects, n_templates, n_patch_r, d, n_mask):
    k_q, k_r = jax.random.split(key)
    query = jax.random.normal(k_q, (n_query, n_patch_q, d), dtype=jnp.float32)
    reference = jax.random.normal(
        k_r, (n_objects, n_templates, n_patch_r, d), dtype=jnp.float32)
    # Unit-norm patch features (as produced upstream of this loss) so scores land in
    # [0, 1]; zero-mask the first n_mask patches of every query to exercise "factor".
    query = query / jnp.linalg.norm(query, axis=-1, keepdims=True)
    reference = reference / jnp.linalg.norm(reference, axis=-1, keepdims=True)
    query = query.at[:, :n_mask, :].set(0.0)
    return query, reference


if __name__ == "__main__":
    key = jax.random.PRNGKey(0)
    k1, k2 = jax.random.split(key)

    # bf16 MXU feeds -> compare against the f32 reference with a loose tolerance.
    TOL = 2e-2

    # Case 1: small, single grid step.
    q1, r1 = _make_inputs(k1, n_query=8, n_patch_q=16,
                          n_objects=3, n_templates=4, n_patch_r=16, d=32, n_mask=2)
    out1 = masked_patch_matrix_similarity(q1, r1)
    jax.block_until_ready(out1)
    ref1 = _reference_impl(q1, r1)
    assert out1.shape == (8, 3, 4)
    assert jnp.allclose(out1, ref1, atol=TOL, rtol=TOL), (
        float(jnp.max(jnp.abs(out1 - ref1))))

    # Case 2: exercises query padding, multiple reference blocks, ragged ref-patch count.
    q2, r2 = _make_inputs(k2, n_query=20, n_patch_q=16,
                          n_objects=5, n_templates=30, n_patch_r=18, d=32, n_mask=3)
    out2 = masked_patch_matrix_similarity(q2, r2)
    jax.block_until_ready(out2)
    ref2 = _reference_impl(q2, r2)
    assert out2.shape == (20, 5, 30)
    assert jnp.allclose(out2, ref2, atol=TOL, rtol=TOL), (
        float(jnp.max(jnp.abs(out2 - ref2))))

    print("KERNEL_OK")
</pallas_src>

<mosaic_0001>
module attributes {stable_mosaic.version = 11 : i64} {
  func.func @_sim_kernel(%arg0: i32, %arg1: i32, %arg2: memref<128x32xbf16, #tpu.memory_space<vmem>>, %arg3: memref<1x32x2048xbf16, #tpu.memory_space<vmem>>, %arg4: memref<8x1xf32, #tpu.memory_space<vmem>>, %arg5: memref<8x128xf32, #tpu.memory_space<vmem>>) attributes {dimension_semantics = [#tpu.dimension_semantics<parallel>, #tpu.dimension_semantics<parallel>], iteration_bounds = array<i64: 1, 1>, scalar_prefetch = 0 : i64, scratch_operands = 0 : i64, tpu.core_type = #tpu.core_type<tc>, window_params = [{transform_indices = @transform_0, window_bounds = array<i64: 128, 32>}, {transform_indices = @transform_1, window_bounds = array<i64: 1, 32, 2048>}, {transform_indices = @transform_2, window_bounds = array<i64: 8, 1>}, {transform_indices = @transform_3, window_bounds = array<i64: 8, 128>}]} {
    %c0 = arith.constant 0 : index
    %c0_0 = arith.constant 0 : index
    %0 = vector.load %arg2[%c0, %c0_0] : memref<128x32xbf16, #tpu.memory_space<vmem>>, vector<128x32xbf16>
    %cst = arith.constant 0xFF800000 : f32
    %1 = vector.broadcast %cst : f32 to vector<128x128xf32>
    %c0_1 = arith.constant 0 : index
    %c0_2 = arith.constant 0 : index
    %c0_3 = arith.constant 0 : index
    %2 = vector.load %arg3[%c0_1, %c0_2, %c0_3] : memref<1x32x2048xbf16, #tpu.memory_space<vmem>>, vector<1x32x512xbf16>
    %3 = vector.shape_cast %2 : vector<1x32x512xbf16> to vector<32x512xbf16>
    %cst_4 = arith.constant dense<0.000000e+00> : vector<128x512xf32>
    %4 = tpu.matmul %0, %3, %cst_4 {dimension_numbers = #tpu.dot_dimension_numbers<[1], [0], [0], [1], [0, 0, 1, 1], [], []>} : vector<128x32xbf16>, vector<32x512xbf16>, vector<128x512xf32> -> vector<128x512xf32>
    %5 = vector.extract_strided_slice %4 {offsets = [0, 0], sizes = [128, 128], strides = [1, 1]} : vector<128x512xf32> to vector<128x128xf32>
    %6 = vector.extract_strided_slice %4 {offsets = [0, 128], sizes = [128, 128], strides = [1, 1]} : vector<128x512xf32> to vector<128x128xf32>
    %7 = arith.maximumf %5, %6 : vector<128x128xf32>
    %8 = vector.extract_strided_slice %4 {offsets = [0, 256], sizes = [128, 128], strides = [1, 1]} : vector<128x512xf32> to vector<128x128xf32>
    %9 = arith.maximumf %7, %8 : vector<128x128xf32>
    %10 = vector.extract_strided_slice %4 {offsets = [0, 384], sizes = [128, 128], strides = [1, 1]} : vector<128x512xf32> to vector<128x128xf32>
    %11 = arith.maximumf %9, %10 : vector<128x128xf32>
    %12 = arith.maximumf %1, %11 : vector<128x128xf32>
    %c0_5 = arith.constant 0 : index
    %c0_6 = arith.constant 0 : index
    %c512 = arith.constant 512 : index
    %13 = vector.load %arg3[%c0_5, %c0_6, %c512] : memref<1x32x2048xbf16, #tpu.memory_space<vmem>>, vector<1x32x512xbf16>
    %14 = vector.shape_cast %13 : vector<1x32x512xbf16> to vector<32x512xbf16>
    %cst_7 = arith.constant dense<0.000000e+00> : vector<128x512xf32>
    %15 = tpu.matmul %0, %14, %cst_7 {dimension_numbers = #tpu.dot_dimension_numbers<[1], [0], [0], [1], [0, 0, 1, 1], [], []>} : vector<128x32xbf16>, vector<32x512xbf16>, vector<128x512xf32> -> vector<128x512xf32>
    %16 = vector.extract_strided_slice %15 {offsets = [0, 0], sizes = [128, 128], strides = [1, 1]} : vector<128x512xf32> to vector<128x128xf32>
    %17 = vector.extract_strided_slice %15 {offsets = [0, 128], sizes = [128, 128], strides = [1, 1]} : vector<128x512xf32> to vector<128x128xf32>
    %18 = arith.maximumf %16, %17 : vector<128x128xf32>
    %19 = vector.extract_strided_slice %15 {offsets = [0, 256], sizes = [128, 128], strides = [1, 1]} : vector<128x512xf32> to vector<128x128xf32>
    %20 = arith.maximumf %18, %19 : vector<128x128xf32>
    %21 = vector.extract_strided_slice %15 {offsets = [0, 384], sizes = [128, 128], strides = [1, 1]} : vector<128x512xf32> to vector<128x128xf32>
    %22 = arith.maximumf %20, %21 : vector<128x128xf32>
    %23 = arith.maximumf %12, %22 : vector<128x128xf32>
    %c0_8 = arith.constant 0 : index
    %c0_9 = arith.constant 0 : index
    %c1024 = arith.constant 1024 : index
    %24 = vector.load %arg3[%c0_8, %c0_9, %c1024] : memref<1x32x2048xbf16, #tpu.memory_space<vmem>>, vector<1x32x512xbf16>
    %25 = vector.shape_cast %24 : vector<1x32x512xbf16> to vector<32x512xbf16>
    %cst_10 = arith.constant dense<0.000000e+00> : vector<128x512xf32>
    %26 = tpu.matmul %0, %25, %cst_10 {dimension_numbers = #tpu.dot_dimension_numbers<[1], [0], [0], [1], [0, 0, 1, 1], [], []>} : vector<128x32xbf16>, vector<32x512xbf16>, vector<128x512xf32> -> vector<128x512xf32>
    %27 = vector.extract_strided_slice %26 {offsets = [0, 0], sizes = [128, 128], strides = [1, 1]} : vector<128x512xf32> to vector<128x128xf32>
    %28 = vector.extract_strided_slice %26 {offsets = [0, 128], sizes = [128, 128], strides = [1, 1]} : vector<128x512xf32> to vector<128x128xf32>
    %29 = arith.maximumf %27, %28 : vector<128x128xf32>
    %30 = vector.extract_strided_slice %26 {offsets = [0, 256], sizes = [128, 128], strides = [1, 1]} : vector<128x512xf32> to vector<128x128xf32>
    %31 = arith.maximumf %29, %30 : vector<128x128xf32>
    %32 = vector.extract_strided_slice %26 {offsets = [0, 384], sizes = [128, 128], strides = [1, 1]} : vector<128x512xf32> to vector<128x128xf32>
    %33 = arith.maximumf %31, %32 : vector<128x128xf32>
    %34 = arith.maximumf %23, %33 : vector<128x128xf32>
    %c0_11 = arith.constant 0 : index
    %c0_12 = arith.constant 0 : index
    %c1536 = arith.constant 1536 : index
    %35 = vector.load %arg3[%c0_11, %c0_12, %c1536] : memref<1x32x2048xbf16, #tpu.memory_space<vmem>>, vector<1x32x512xbf16>
    %36 = vector.shape_cast %35 : vector<1x32x512xbf16> to vector<32x512xbf16>
    %cst_13 = arith.constant dense<0.000000e+00> : vector<128x512xf32>
    %37 = tpu.matmul %0, %36, %cst_13 {dimension_numbers = #tpu.dot_dimension_numbers<[1], [0], [0], [1], [0, 0, 1, 1], [], []>} : vector<128x32xbf16>, vector<32x512xbf16>, vector<128x512xf32> -> vector<128x512xf32>
    %38 = vector.extract_strided_slice %37 {offsets = [0, 0], sizes = [128, 128], strides = [1, 1]} : vector<128x512xf32> to vector<128x128xf32>
    %39 = vector.extract_strided_slice %37 {offsets = [0, 128], sizes = [128, 128], strides = [1, 1]} : vector<128x512xf32> to vector<128x128xf32>
    %40 = arith.maximumf %38, %39 : vector<128x128xf32>
    %41 = vector.extract_strided_slice %37 {offsets = [0, 256], sizes = [128, 128], strides = [1, 1]} : vector<128x512xf32> to vector<128x128xf32>
    %42 = arith.maximumf %40, %41 : vector<128x128xf32>
    %43 = vector.extract_strided_slice %37 {offsets = [0, 384], sizes = [128, 128], strides = [1, 1]} : vector<128x512xf32> to vector<128x128xf32>
    %44 = arith.maximumf %42, %43 : vector<128x128xf32>
    %45 = arith.maximumf %34, %44 : vector<128x128xf32>
    %46 = vector.shape_cast %45 : vector<128x128xf32> to vector<8x16x128xf32>
    %cst_14 = arith.constant dense<0.000000e+00> : vector<8x128xf32>
    %47 = vector.multi_reduction <add>, %46, %cst_14 [1] : vector<8x16x128xf32> to vector<8x128xf32>
    %c0_15 = arith.constant 0 : index
    %c0_16 = arith.constant 0 : index
    %48 = vector.load %arg4[%c0_15, %c0_16] : memref<8x1xf32, #tpu.memory_space<vmem>>, vector<8x1xf32>
    %49 = vector.broadcast %48 : vector<8x1xf32> to vector<8x128xf32>
    %50 = arith.mulf %47, %49 : vector<8x128xf32>
    %cst_17 = arith.constant 0.000000e+00 : f32
    %cst_18 = arith.constant 1.000000e+00 : f32
    %51 = vector.broadcast %cst_17 : f32 to vector<8x128xf32>
    %52 = arith.maximumf %51, %50 : vector<8x128xf32>
    %53 = vector.broadcast %cst_18 : f32 to vector<8x128xf32>
    %54 = arith.minimumf %53, %52 : vector<8x128xf32>
    %c0_19 = arith.constant 0 : index
    %c0_20 = arith.constant 0 : index
    %55 = vector.load %arg5[%c0_19, %c0_20] : memref<8x128xf32, #tpu.memory_space<vmem>>, vector<8x128xf32>
    tpu.vector_store %arg5[%c0_19, %c0_20], %54 {strides = array<i32>} : memref<8x128xf32, #tpu.memory_space<vmem>>, vector<8x128xf32>,
    return
  }
  func.func @transform_0(%arg0: i32, %arg1: i32) -> (i32, i32) {
    %c0_i32 = arith.constant 0 : i32
    %c0_i32_0 = arith.constant 0 : i32
    return %arg0, %c0_i32 : i32, i32
  }
  func.func @transform_1(%arg0: i32, %arg1: i32) -> (i32, i32, i32) {
    %c0_i32 = arith.constant 0 : i32
    %c0_i32_0 = arith.constant 0 : i32
    %c0_i32_1 = arith.constant 0 : i32
    return %arg1, %c0_i32, %c0_i32_0 : i32, i32, i32
  }
  func.func @transform_2(%arg0: i32, %arg1: i32) -> (i32, i32) {
    %c0_i32 = arith.constant 0 : i32
    %c0_i32_0 = arith.constant 0 : i32
    return %arg0, %c0_i32 : i32, i32
  }
  func.func @transform_3(%arg0: i32, %arg1: i32) -> (i32, i32) {
    %c0_i32 = arith.constant 0 : i32
    return %arg0, %arg1 : i32, i32
  }
}

</mosaic_0001>

<bundles_post_ra>
// kernel: tpu_custom_call.1
= control target key start
LH: loop header
LB: loop body
LE: loop exit
PB: predicated region body
PF: predicated region fallthrough
CT: control target
= control target key end

     0   :  { %8 = vsyncpa [#allocation3], 0  ;;  %s2295_s0 = inlined_call_operand.vmem [shape: bf16[128,32], index: 0, kind: input, shape index: {}]   ;;  %s2296_s1 = inlined_call_operand.hbm [shape: bf16[1,32,2048], index: 1, kind: input, shape index: {}]   ;;  %s2297_s2 = inlined_call_operand.vmem [shape: f32[8,1], index: 2, kind: input, shape index: {}]   ;;  %s2298_s3 = inlined_call_operand.hbm [shape: f32[8,128], index: 3, kind: output, shape index: {}]  }
   0x1   :  { %9 = vsyncpa [#allocation4], 0  ;;  %s1759_s12 = smov [#allocation2]   ;;  %s1711_s16 = scalar_lea.hbm %s2296_s1, 4096 }
   0x2   :  { %s17_s13 = sshll.u32 %s1759_s12, 4  ;;  %p1712_p0 = scmp.ne.s32.totalorder %s2296_s1, %s1711_s16  ;;  %s18_s13 = int_to_ptr.vmem [resolvable:$true] %s17_s13 }
   0x3   :  { %p1715_p1 = scmp.lt.u32.totalorder %s1711_s16, %s2296_s1 }
   0x5   :  { %p1717_p2 = pnand %p1715_p1, %p1712_p0 }
   0x7   :  { %1720 = shalt.err (!%p1717_p2)
}
   0x8   :  { %s1721_s21 = scalar_lea.vmem %s18_s13, 4096  ;;  %p1726_p4 = scmp.lt.s32.totalorder %s18_s13, %s18_s13 }
   0x9   :  { %p1722_p3 = scmp.ne.s32.totalorder %s18_s13, %s1721_s21  ;;  %p1727_p5 = scmp.lt.s32.totalorder %s1721_s21, %s1721_s21 }
   0xb   :  { %p1728_p6 = por %p1727_p5, %p1726_p4 }
   0xd   :  { %p1729_p7 = pnand %p1728_p6, %p1722_p3 }
   0xf   :  { %1732 = shalt.err (!%p1729_p7)
}
  0x10   :  { %s1760_s22 = smov 1024   ;;  %s1761_s23 = smov 64  }
  0x11   :  { %23 = dma.hbm_to_vmem [thread:$0]  %s2296_s1, 4096, %s18_s13, [#allocation3], %s1760_s22, %s1760_s22, %s1761_s23  }
  0x12   :  { %1755 = dma.done.wait [#allocation3], 4096  }
  0x13   :  { %1756 = vsyncadd [#allocation3], 4294963200  ;;  %v1762_v0 = vmov 0   ;;  %v46_v1 = vld [vmem:[#allocation2] sm:$0xff]  ;;  %v47_v3 = vld [vmem:[#allocation2 + $0x8] sm:$0xff]  ;;  %vm134_vm0 = vcmask 261120  }
  0x14   :  { %191 = vmatprep.mubr.bf16.mxu0 %v1762_v0  ;;  %304 = vmatprep.mubr.bf16.mxu1 %v1762_v0  ;;  %v48_v2 = vld [vmem:[#allocation2 + $0x40] sm:$0xff]  ;;  %v49_v6 = vld [vmem:[#allocation2 + $0x48] sm:$0xff]  ;;  %v433_v15 = vld [vmem:[#allocation2 + $0x10] sm:$0xff]  ;;  %vm1556_vm1 = vcmask 1041409   ;;  %vm1559_vm2 = vcmask 1042434   ;;  %vm1562_vm3 = vcmask 1043459  }
  0x15   :  { %1702 = vset.pattern.permute.xlu0 %v1762_v0  ;;  %v1602_v4 = vcombine.high %v46_v1, %v48_v2  ;;  %v1601_v5 = vcombine.low %v46_v1, %v48_v2  ;;  %v50_v7 = vld [vmem:[#allocation2 + $0x80] sm:$0xff]  ;;  %v1604_v9 = vcombine.high %v47_v3, %v49_v6  ;;  %v1603_v10 = vcombine.low %v47_v3, %v49_v6  ;;  %v51_v12 = vld [vmem:[#allocation2 + $0x88] sm:$0xff]  ;;  %v435_v17 = vld [vmem:[#allocation2 + $0x50] sm:$0xff] }
  0x16   :  { %v52_v8 = vld [vmem:[#allocation2 + $0xc0] sm:$0xff]  ;;  %v53_v13 = vld [vmem:[#allocation2 + $0xc8] sm:$0xff]  ;;  %v434_v18 = vld [vmem:[#allocation2 + $0x18] sm:$0xff]  ;;  %v1626_v21 = vcombine.high %v433_v15, %v435_v17  ;;  %v1625_v24 = vcombine.low %v433_v15, %v435_v17  ;;  %vm1565_vm4 = vcmask 1044484   ;;  %vm1568_vm5 = vcmask 1045509  }
  0x17   :  { %v1606_v11 = vcombine.high %v50_v7, %v52_v8  ;;  %159 = vmatprep.subr.bf16.mxu0 %v1602_v4  ;;  %v1608_v14 = vcombine.high %v51_v12, %v53_v13  ;;  %272 = vmatprep.subr.bf16.mxu1 %v1604_v9  ;;  %v1605_v16 = vcombine.low %v50_v7, %v52_v8  ;;  %v436_v19 = vld [vmem:[#allocation2 + $0x58] sm:$0xff]  ;;  %v1802_v23 = vld [vmem:[%s2295_s0] sm:$0xff]   ;;  %v437_v26 = vld [vmem:[#allocation2 + $0x90] sm:$0xff]  ;;  %vm1571_vm6 = vcmask 1046534  }
  0x18   :  { %160 = vmatpush1.bf16.msra.mxu0 %v1601_v5  ;;  %273 = vmatpush1.bf16.msra.mxu1 %v1603_v10  ;;  %v1607_v20 = vcombine.low %v51_v12, %v53_v13  ;;  %v1628_v22 = vcombine.high %v434_v18, %v436_v19  ;;  %v1627_v25 = vcombine.low %v434_v18, %v436_v19  ;;  %v439_v27 = vld [vmem:[#allocation2 + $0xd0] sm:$0xff]  ;;  %v438_v28 = vld [vmem:[#allocation2 + $0x98] sm:$0xff]  ;;  %v771_v34 = vld [vmem:[#allocation2 + $0x20] sm:$0xff]  ;;  %vm1574_vm7 = vcmask 1047559  }
  0x19   :  { %161 = vmatprep.subr.bf16.mxu0 %v1606_v11  ;;  %274 = vmatprep.subr.bf16.mxu1 %v1608_v14  ;;  %v1630_v29 = vcombine.high %v437_v26, %v439_v27  ;;  %v440_v30 = vld [vmem:[#allocation2 + $0xd8] sm:$0xff]  ;;  %v1629_v32 = vcombine.low %v437_v26, %v439_v27  ;;  %v773_v35 = vld [vmem:[#allocation2 + $0x60] sm:$0xff]  ;;  %v772_v37 = vld [vmem:[#allocation2 + $0x28] sm:$0xff] }
  0x1a   :  { %v1632_v31 = vcombine.high %v438_v28, %v440_v30  ;;  %v1631_v33 = vcombine.low %v438_v28, %v440_v30  ;;  %v1650_v36 = vcombine.high %v771_v34, %v773_v35  ;;  %v774_v38 = vld [vmem:[#allocation2 + $0x68] sm:$0xff]  ;;  %v1824_v41 = vld [vmem:[%s2295_s0 + $0x10] sm:$0xff]   ;;  %v1835_v42 = vld [vmem:[%s2295_s0 + $0x18] sm:$0xff]   ;;  %v1649_v49 = vcombine.low %v771_v34, %v773_v35 }
  0x1b   :  { %v1813_v39 = vld [vmem:[%s2295_s0 + $0x8] sm:$0xff]   ;;  %v1652_v40 = vcombine.high %v772_v37, %v774_v38  ;;  %v1846_v43 = vld [vmem:[%s2295_s0 + $0x20] sm:$0xff]   ;;  %v1868_v45 = vld [vmem:[%s2295_s0 + $0x30] sm:$0xff]   ;;  %v1651_v52 = vcombine.low %v772_v37, %v774_v38 }
  0x1c   :  { %162 = vmatpush1.bf16.msra.mxu0 %v1605_v16  ;;  %275 = vmatpush1.bf16.msra.mxu1 %v1607_v20  ;;  %v1857_v44 = vld [vmem:[%s2295_s0 + $0x28] sm:$0xff]   ;;  %v1879_v46 = vld [vmem:[%s2295_s0 + $0x38] sm:$0xff]   ;;  %v775_v47 = vld [vmem:[#allocation2 + $0xa0] sm:$0xff] }
  0x1d   :  { %481 = vmatprep.subr.bf16.mxu0 %v1626_v21  ;;  %594 = vmatprep.subr.bf16.mxu1 %v1628_v22  ;;  %v777_v48 = vld [vmem:[#allocation2 + $0xe0] sm:$0xff]  ;;  %v776_v50 = vld [vmem:[#allocation2 + $0xa8] sm:$0xff]  ;;  %v1109_v54 = vld [vmem:[#allocation2 + $0x30] sm:$0xff] }
  0x1e   :  { %v778_v51 = vld [vmem:[#allocation2 + $0xe8] sm:$0xff]  ;;  %v1654_v53 = vcombine.high %v775_v47, %v777_v48  ;;  %v1111_v55 = vld [vmem:[#allocation2 + $0x70] sm:$0xff]  ;;  %v1110_v57 = vld [vmem:[#allocation2 + $0x38] sm:$0xff]  ;;  %v1653_v59 = vcombine.low %v775_v47, %v777_v48 }
  0x1f   :  { %1609 = vmatmul.mubr.msk.bf16.vlgmr.msra.gmra.mrb[0].mxu0 %vm134_vm0, %v1802_v23  ;;  %1617 = vmatmul.mubr.msk.bf16.vlgmr.msra.gmra.mrb[0].mxu1 %vm134_vm0, %v1802_v23  ;;  %v1656_v56 = vcombine.high %v776_v50, %v778_v51  ;;  %v1112_v58 = vld [vmem:[#allocation2 + $0x78] sm:$0xff]  ;;  %v1655_v60 = vcombine.low %v776_v50, %v778_v51  ;;  %v1674_v61 = vcombine.high %v1109_v54, %v1111_v55  ;;  %v1113_v63 = vld [vmem:[#allocation2 + $0xb0] sm:$0xff]  ;;  %v1503_v10 = vld [vmem:[%s2297_s2] sm:$0xff]  ;;  %s1763_s2 = smov [#allocation5]  }
  0x20   :  { %482 = vmatpush1.bf16.msra.mxu0 %v1625_v24  ;;  %595 = vmatpush1.bf16.msra.mxu1 %v1627_v25  ;;  %v1676_v62 = vcombine.high %v1110_v57, %v1112_v58  ;;  %v1115_v1 = vld [vmem:[#allocation2 + $0xf0] sm:$0xff]  ;;  %v1673_v2 = vcombine.low %v1109_v54, %v1111_v55  ;;  %v1114_v3 = vld [vmem:[#allocation2 + $0xb8] sm:$0xff]  ;;  %v1675_v5 = vcombine.low %v1110_v57, %v1112_v58  ;;  %s1584_s15 = sshll.u32 %s1763_s2, 4  ;;  %s1585_s15 = int_to_ptr.vmem [resolvable:$true] %s1584_s15 }
  0x21   :  { %201 = vmatprep.mubr.bf16.mxu0 %v1762_v0  ;;  %314 = vmatprep.mubr.bf16.mxu1 %v1762_v0  ;;  %v1116_v4 = vld [vmem:[#allocation2 + $0xf8] sm:$0xff]  ;;  %v1678_v6 = vcombine.high %v1113_v63, %v1115_v1  ;;  %v1677_v8 = vcombine.low %v1113_v63, %v1115_v1  ;;  %s1733_s16 = scalar_lea.vmem %s1585_s15, 128  ;;  %p1738_p9 = scmp.lt.s32.totalorder %s1585_s15, %s1585_s15 }
  0x22   :  { %483 = vmatprep.subr.bf16.mxu0 %v1630_v29  ;;  %596 = vmatprep.subr.bf16.mxu1 %v1632_v31  ;;  %v1680_v7 = vcombine.high %v1114_v3, %v1116_v4  ;;  %v1679_v9 = vcombine.low %v1114_v3, %v1116_v4  ;;  %p1734_p8 = scmp.ne.s32.totalorder %s1585_s15, %s1733_s16  ;;  %p1739_p10 = scmp.lt.s32.totalorder %s1733_s16, %s1733_s16 }
  0x23   :  { %1506 = vperm.xlu0 %1702, %v1503_v10  }
  0x24   :  { %484 = vmatpush1.bf16.msra.mxu0 %v1629_v32  ;;  %597 = vmatpush1.bf16.msra.mxu1 %v1631_v33  ;;  %p1740_p11 = por %p1739_p10, %p1738_p9 }
  0x25   :  { %819 = vmatprep.subr.bf16.mxu0 %v1650_v36  ;;  %932 = vmatprep.subr.bf16.mxu1 %v1652_v40 }
  0x26   :  { %p1741_p12 = pnand %p1740_p11, %p1734_p8 }
  0x27   :  { %1610 = vmatmul.mubr.msk.bf16.gmra.mrb[4].mxu0 %vm134_vm0, %v1813_v39  ;;  %1618 = vmatmul.mubr.msk.bf16.gmra.mrb[4].mxu1 %vm134_vm0, %v1813_v39 }
  0x28   :  { %211 = vmatprep.mubr.bf16.mxu0 %v1762_v0  ;;  %324 = vmatprep.mubr.bf16.mxu1 %v1762_v0 }
  0x2f   :  { %1611 = vmatmul.mubr.msk.bf16.gmra.mrb[8].mxu0 %vm134_vm0, %v1824_v41  ;;  %1619 = vmatmul.mubr.msk.bf16.gmra.mrb[8].mxu1 %vm134_vm0, %v1824_v41 }
  0x30   :  { %221 = vmatprep.mubr.bf16.mxu0 %v1762_v0  ;;  %334 = vmatprep.mubr.bf16.mxu1 %v1762_v0 }
  0x37   :  { %1612 = vmatmul.mubr.msk.bf16.gmra.mrb[12].mxu0 %vm134_vm0, %v1835_v42  ;;  %1620 = vmatmul.mubr.msk.bf16.gmra.mrb[12].mxu1 %vm134_vm0, %v1835_v42 }
  0x38   :  { %231 = vmatprep.mubr.bf16.mxu0 %v1762_v0  ;;  %344 = vmatprep.mubr.bf16.mxu1 %v1762_v0 }
  0x3f   :  { %1613 = vmatmul.mubr.msk.bf16.gmra.mrb[16].mxu0 %vm134_vm0, %v1846_v43  ;;  %1621 = vmatmul.mubr.msk.bf16.gmra.mrb[16].mxu1 %vm134_vm0, %v1846_v43 }
  0x40   :  { %241 = vmatprep.mubr.bf16.mxu0 %v1762_v0  ;;  %354 = vmatprep.mubr.bf16.mxu1 %v1762_v0 }
  0x47   :  { %1614 = vmatmul.mubr.msk.bf16.gmra.mrb[20].mxu0 %vm134_vm0, %v1857_v44  ;;  %1622 = vmatmul.mubr.msk.bf16.gmra.mrb[20].mxu1 %vm134_vm0, %v1857_v44 }
  0x48   :  { %251 = vmatprep.mubr.bf16.mxu0 %v1762_v0  ;;  %364 = vmatprep.mubr.bf16.mxu1 %v1762_v0 }
  0x4f   :  { %1615 = vmatmul.mubr.msk.bf16.gmra.mrb[24].mxu0 %vm134_vm0, %v1868_v45  ;;  %1623 = vmatmul.mubr.msk.bf16.gmra.mrb[24].mxu1 %vm134_vm0, %v1868_v45 }
  0x50   :  { %261 = vmatprep.mubr.bf16.mxu0 %v1762_v0  ;;  %374 = vmatprep.mubr.bf16.mxu1 %v1762_v0 }
  0x57   :  { %1616 = vmatmul.mubr.msk.bf16.gmra.mrb[28].mxu0 %vm134_vm0, %v1879_v46  ;;  %1624 = vmatmul.mubr.msk.bf16.gmra.mrb[28].mxu1 %vm134_vm0, %v1879_v46 }
  0x58   :  { %513 = vmatprep.mubr.bf16.mxu0 %v1762_v0  ;;  %626 = vmatprep.mubr.bf16.mxu1 %v1762_v0 }
  0x5f   :  { %1633 = vmatmul.mubr.msk.bf16.vlgmr.msra.gmra.mrb[32].mxu0 %vm134_vm0, %v1802_v23  ;;  %1641 = vmatmul.mubr.msk.bf16.vlgmr.msra.gmra.mrb[32].mxu1 %vm134_vm0, %v1802_v23 }
  0x60   :  { %820 = vmatpush1.bf16.msra.mxu0 %v1649_v49  ;;  %933 = vmatpush1.bf16.msra.mxu1 %v1651_v52 }
  0x61   :  { %523 = vmatprep.mubr.bf16.mxu0 %v1762_v0  ;;  %636 = vmatprep.mubr.bf16.mxu1 %v1762_v0 }
  0x62   :  { %821 = vmatprep.subr.bf16.mxu0 %v1654_v53  ;;  %934 = vmatprep.subr.bf16.mxu1 %v1656_v56 }
  0x64   :  { %822 = vmatpush1.bf16.msra.mxu0 %v1653_v59  ;;  %935 = vmatpush1.bf16.msra.mxu1 %v1655_v60 }
  0x65   :  { %1157 = vmatprep.subr.bf16.mxu0 %v1674_v61  ;;  %1270 = vmatprep.subr.bf16.mxu1 %v1676_v62 }
  0x67   :  { %1634 = vmatmul.mubr.msk.bf16.gmra.mrb[36].mxu0 %vm134_vm0, %v1813_v39  ;;  %1642 = vmatmul.mubr.msk.bf16.gmra.mrb[36].mxu1 %vm134_vm0, %v1813_v39 }
  0x68   :  { %533 = vmatprep.mubr.bf16.mxu0 %v1762_v0  ;;  %646 = vmatprep.mubr.bf16.mxu1 %v1762_v0 }
  0x6f   :  { %1635 = vmatmul.mubr.msk.bf16.gmra.mrb[40].mxu0 %vm134_vm0, %v1824_v41  ;;  %1643 = vmatmul.mubr.msk.bf16.gmra.mrb[40].mxu1 %vm134_vm0, %v1824_v41 }
  0x70   :  { %543 = vmatprep.mubr.bf16.mxu0 %v1762_v0  ;;  %656 = vmatprep.mubr.bf16.mxu1 %v1762_v0 }
  0x77   :  { %1636 = vmatmul.mubr.msk.bf16.gmra.mrb[44].mxu0 %vm134_vm0, %v1835_v42  ;;  %1644 = vmatmul.mubr.msk.bf16.gmra.mrb[44].mxu1 %vm134_vm0, %v1835_v42 }
  0x78   :  { %553 = vmatprep.mubr.bf16.mxu0 %v1762_v0  ;;  %666 = vmatprep.mubr.bf16.mxu1 %v1762_v0 }
  0x7f   :  { %1637 = vmatmul.mubr.msk.bf16.gmra.mrb[48].mxu0 %vm134_vm0, %v1846_v43  ;;  %1645 = vmatmul.mubr.msk.bf16.gmra.mrb[48].mxu1 %vm134_vm0, %v1846_v43 }
  0x80   :  { %563 = vmatprep.mubr.bf16.mxu0 %v1762_v0  ;;  %676 = vmatprep.mubr.bf16.mxu1 %v1762_v0 }
  0x87   :  { %1638 = vmatmul.mubr.msk.bf16.gmra.mrb[52].mxu0 %vm134_vm0, %v1857_v44  ;;  %1646 = vmatmul.mubr.msk.bf16.gmra.mrb[52].mxu1 %vm134_vm0, %v1857_v44 }
  0x88   :  { %573 = vmatprep.mubr.bf16.mxu0 %v1762_v0  ;;  %686 = vmatprep.mubr.bf16.mxu1 %v1762_v0 }
  0x8f   :  { %1639 = vmatmul.mubr.msk.bf16.gmra.mrb[56].mxu0 %vm134_vm0, %v1868_v45  ;;  %1647 = vmatmul.mubr.msk.bf16.gmra.mrb[56].mxu1 %vm134_vm0, %v1868_v45 }
  0x90   :  { %583 = vmatprep.mubr.bf16.mxu0 %v1762_v0  ;;  %696 = vmatprep.mubr.bf16.mxu1 %v1762_v0 }
  0x97   :  { %1640 = vmatmul.mubr.msk.bf16.gmra.mrb[60].mxu0 %vm134_vm0, %v1879_v46  ;;  %1648 = vmatmul.mubr.msk.bf16.gmra.mrb[60].mxu1 %vm134_vm0, %v1879_v46 }
  0x98   :  { %851 = vmatprep.mubr.bf16.mxu0 %v1762_v0  ;;  %964 = vmatprep.mubr.bf16.mxu1 %v1762_v0 }
  0x9f   :  { %1657 = vmatmul.mubr.msk.bf16.vlgmr.msra.gmra.mrb[64].mxu0 %vm134_vm0, %v1802_v23  ;;  %1665 = vmatmul.mubr.msk.bf16.vlgmr.msra.gmra.mrb[64].mxu1 %vm134_vm0, %v1802_v23 }
  0xa0   :  { %1158 = vmatpush1.bf16.msra.mxu0 %v1673_v2  ;;  %1271 = vmatpush1.bf16.msra.mxu1 %v1675_v5 }
  0xa1   :  { %861 = vmatprep.mubr.bf16.mxu0 %v1762_v0  ;;  %974 = vmatprep.mubr.bf16.mxu1 %v1762_v0 }
  0xa2   :  { %1159 = vmatprep.subr.bf16.mxu0 %v1678_v6  ;;  %1272 = vmatprep.subr.bf16.mxu1 %v1680_v7 }
  0xa4   :  { %1160 = vmatpush1.bf16.msra.mxu0 %v1677_v8  ;;  %1273 = vmatpush1.bf16.msra.mxu1 %v1679_v9 }
  0xa7   :  { %1658 = vmatmul.mubr.msk.bf16.gmra.mrb[68].mxu0 %vm134_vm0, %v1813_v39  ;;  %1666 = vmatmul.mubr.msk.bf16.gmra.mrb[68].mxu1 %vm134_vm0, %v1813_v39 }
  0xa8   :  { %871 = vmatprep.mubr.bf16.mxu0 %v1762_v0  ;;  %984 = vmatprep.mubr.bf16.mxu1 %v1762_v0 }
  0xaf   :  { %1659 = vmatmul.mubr.msk.bf16.gmra.mrb[72].mxu0 %vm134_vm0, %v1824_v41  ;;  %1667 = vmatmul.mubr.msk.bf16.gmra.mrb[72].mxu1 %vm134_vm0, %v1824_v41 }
  0xb0   :  { %881 = vmatprep.mubr.bf16.mxu0 %v1762_v0  ;;  %994 = vmatprep.mubr.bf16.mxu1 %v1762_v0 }
  0xb7   :  { %1660 = vmatmul.mubr.msk.bf16.gmra.mrb[76].mxu0 %vm134_vm0, %v1835_v42  ;;  %1668 = vmatmul.mubr.msk.bf16.gmra.mrb[76].mxu1 %vm134_vm0, %v1835_v42 }
  0xb8   :  { %891 = vmatprep.mubr.bf16.mxu0 %v1762_v0  ;;  %1004 = vmatprep.mubr.bf16.mxu1 %v1762_v0 }
  0xbf   :  { %1661 = vmatmul.mubr.msk.bf16.gmra.mrb[80].mxu0 %vm134_vm0, %v1846_v43  ;;  %1669 = vmatmul.mubr.msk.bf16.gmra.mrb[80].mxu1 %vm134_vm0, %v1846_v43 }
  0xc0   :  { %901 = vmatprep.mubr.bf16.mxu0 %v1762_v0  ;;  %1014 = vmatprep.mubr.bf16.mxu1 %v1762_v0 }
  0xc7   :  { %1662 = vmatmul.mubr.msk.bf16.gmra.mrb[84].mxu0 %vm134_vm0, %v1857_v44  ;;  %1670 = vmatmul.mubr.msk.bf16.gmra.mrb[84].mxu1 %vm134_vm0, %v1857_v44 }
  0xc8   :  { %911 = vmatprep.mubr.bf16.mxu0 %v1762_v0  ;;  %1024 = vmatprep.mubr.bf16.mxu1 %v1762_v0 }
  0xcf   :  { %1663 = vmatmul.mubr.msk.bf16.gmra.mrb[88].mxu0 %vm134_vm0, %v1868_v45  ;;  %1671 = vmatmul.mubr.msk.bf16.gmra.mrb[88].mxu1 %vm134_vm0, %v1868_v45 }
  0xd0   :  { %921 = vmatprep.mubr.bf16.mxu0 %v1762_v0  ;;  %1034 = vmatprep.mubr.bf16.mxu1 %v1762_v0 }
  0xd7   :  { %1664 = vmatmul.mubr.msk.bf16.gmra.mrb[92].mxu0 %vm134_vm0, %v1879_v46  ;;  %1672 = vmatmul.mubr.msk.bf16.gmra.mrb[92].mxu1 %vm134_vm0, %v1879_v46 }
  0xd8   :  { %1189 = vmatprep.mubr.bf16.mxu0 %v1762_v0  ;;  %1302 = vmatprep.mubr.bf16.mxu1 %v1762_v0 }
  0xdf   :  { %1681 = vmatmul.mubr.msk.bf16.vlgmr.msra.gmra.mrb[96].mxu0 %vm134_vm0, %v1802_v23  ;;  %1689 = vmatmul.mubr.msk.bf16.vlgmr.msra.gmra.mrb[96].mxu1 %vm134_vm0, %v1802_v23 }
  0xe0   :  { %1199 = vmatprep.mubr.bf16.mxu0 %v1762_v0  ;;  %1312 = vmatprep.mubr.bf16.mxu1 %v1762_v0 }
  0xe7   :  { %1682 = vmatmul.mubr.msk.bf16.gmra.mrb[100].mxu0 %vm134_vm0, %v1813_v39  ;;  %1690 = vmatmul.mubr.msk.bf16.gmra.mrb[100].mxu1 %vm134_vm0, %v1813_v39 }
  0xe8   :  { %1209 = vmatprep.mubr.bf16.mxu0 %v1762_v0  ;;  %1322 = vmatprep.mubr.bf16.mxu1 %v1762_v0 }
  0xef   :  { %1683 = vmatmul.mubr.msk.bf16.gmra.mrb[104].mxu0 %vm134_vm0, %v1824_v41  ;;  %1691 = vmatmul.mubr.msk.bf16.gmra.mrb[104].mxu1 %vm134_vm0, %v1824_v41 }
  0xf0   :  { %1219 = vmatprep.mubr.bf16.mxu0 %v1762_v0  ;;  %1332 = vmatprep.mubr.bf16.mxu1 %v1762_v0 }
  0xf2   :  { %v193_v11 = vpop.f32.mrb[0].mxu0  ;;  %v306_v13 = vpop.f32.mrb[0].mxu1 }
  0xf3   :  { %v195_v12 = vpop.f32.mrb[1].mxu0  ;;  %v2004_v16 = vpop.f32.mrb[1].mxu1 }
  0xf4   :  { %v385_v14 = vmax.f32 %v193_v11, %v195_v12  ;;  %v197_v15 = vpop.f32.mrb[2].mxu0  ;;  %v310_v18 = vpop.f32.mrb[2].mxu1 }
  0xf5   :  { %v199_v17 = vpop.f32.mrb[3].mxu0  ;;  %v2008_v21 = vpop.f32.mrb[3].mxu1 }
  0xf6   :  { %v2006_v19 = vmax.f32 %v385_v14, %v306_v13  ;;  %v386_v20 = vmax.f32 %v197_v15, %v199_v17 }
  0xf7   :  { %1684 = vmatmul.mubr.msk.bf16.gmra.mrb[108].mxu0 %vm134_vm0, %v1835_v42  ;;  %1692 = vmatmul.mubr.msk.bf16.gmra.mrb[108].mxu1 %vm134_vm0, %v1835_v42 }
  0xf8   :  { %v417_v22 = vmax.f32 %v2006_v19, %v2004_v16  ;;  %v2014_v23 = vmax.f32 %v386_v20, %v310_v18  ;;  %1229 = vmatprep.mubr.bf16.mxu0 %v1762_v0  ;;  %1342 = vmatprep.mubr.bf16.mxu1 %v1762_v0 }
  0xfa   :  { %v418_v24 = vmax.f32 %v2014_v23, %v2008_v21  ;;  %v203_v25 = vpop.f32.mrb[4].mxu0  ;;  %v316_v27 = vpop.f32.mrb[4].mxu1 }
  0xfb   :  { %v205_v26 = vpop.f32.mrb[5].mxu0  ;;  %v2022_v30 = vpop.f32.mrb[5].mxu1 }
  0xfc   :  { %v387_v28 = vmax.f32 %v203_v25, %v205_v26  ;;  %v207_v29 = vpop.f32.mrb[6].mxu0  ;;  %v320_v32 = vpop.f32.mrb[6].mxu1 }
  0xfd   :  { %v209_v31 = vpop.f32.mrb[7].mxu0  ;;  %v2026_v35 = vpop.f32.mrb[7].mxu1 }
  0xfe   :  { %v2024_v33 = vmax.f32 %v387_v28, %v316_v27  ;;  %v388_v34 = vmax.f32 %v207_v29, %v209_v31 }
  0xff   :  { %1685 = vmatmul.mubr.msk.bf16.gmra.mrb[112].mxu0 %vm134_vm0, %v1846_v43  ;;  %1693 = vmatmul.mubr.msk.bf16.gmra.mrb[112].mxu1 %vm134_vm0, %v1846_v43 }
 0x100   :  { %v419_v36 = vmax.f32 %v2024_v33, %v2022_v30  ;;  %v2032_v37 = vmax.f32 %v388_v34, %v320_v32  ;;  %1239 = vmatprep.mubr.bf16.mxu0 %v1762_v0  ;;  %1352 = vmatprep.mubr.bf16.mxu1 %v1762_v0 }
 0x102   :  { %v420_v38 = vmax.f32 %v2032_v37, %v2026_v35  ;;  %v213_v39 = vpop.f32.mrb[8].mxu0  ;;  %v326_v41 = vpop.f32.mrb[8].mxu1 }
 0x103   :  { %v215_v40 = vpop.f32.mrb[9].mxu0  ;;  %v2040_v48 = vpop.f32.mrb[9].mxu1 }
 0x104   :  { %v389_v42 = vmax.f32 %v213_v39, %v215_v40  ;;  %v217_v47 = vpop.f32.mrb[10].mxu0  ;;  %v330_v50 = vpop.f32.mrb[10].mxu1 }
 0x105   :  { %v219_v49 = vpop.f32.mrb[11].mxu0  ;;  %v2044_v43 = vpop.f32.mrb[11].mxu1 }
 0x106   :  { %v2042_v51 = vmax.f32 %v389_v42, %v326_v41  ;;  %v390_v52 = vmax.f32 %v217_v47, %v219_v49 }
 0x107   :  { %1686 = vmatmul.mubr.msk.bf16.gmra.mrb[116].mxu0 %vm134_vm0, %v1857_v44  ;;  %1694 = vmatmul.mubr.msk.bf16.gmra.mrb[116].mxu1 %vm134_vm0, %v1857_v44 }
 0x108   :  { %v421_v53 = vmax.f32 %v2042_v51, %v2040_v48  ;;  %v2050_v54 = vmax.f32 %v390_v52, %v330_v50  ;;  %1249 = vmatprep.mubr.bf16.mxu0 %v1762_v0  ;;  %1362 = vmatprep.mubr.bf16.mxu1 %v1762_v0 }
 0x10a   :  { %v422_v55 = vmax.f32 %v2050_v54, %v2044_v43  ;;  %v223_v56 = vpop.f32.mrb[12].mxu0  ;;  %v336_v58 = vpop.f32.mrb[12].mxu1 }
 0x10b   :  { %v225_v57 = vpop.f32.mrb[13].mxu0  ;;  %v2058_v61 = vpop.f32.mrb[13].mxu1 }
 0x10c   :  { %v391_v59 = vmax.f32 %v223_v56, %v225_v57  ;;  %v227_v60 = vpop.f32.mrb[14].mxu0  ;;  %v340_v63 = vpop.f32.mrb[14].mxu1 }
 0x10d   :  { %v229_v62 = vpop.f32.mrb[15].mxu0  ;;  %v2062_v44 = vpop.f32.mrb[15].mxu1 }
 0x10e   :  { %v2060_v1 = vmax.f32 %v391_v59, %v336_v58  ;;  %v392_v2 = vmax.f32 %v227_v60, %v229_v62 }
 0x10f   :  { %1687 = vmatmul.mubr.msk.bf16.gmra.mrb[120].mxu0 %vm134_vm0, %v1868_v45  ;;  %1695 = vmatmul.mubr.msk.bf16.gmra.mrb[120].mxu1 %vm134_vm0, %v1868_v45 }
 0x110   :  { %v423_v3 = vmax.f32 %v2060_v1, %v2058_v61  ;;  %v2068_v4 = vmax.f32 %v392_v2, %v340_v63  ;;  %1259 = vmatprep.mubr.bf16.mxu0 %v1762_v0  ;;  %1372 = vmatprep.mubr.bf16.mxu1 %v1762_v0 }
 0x112   :  { %v424_v5 = vmax.f32 %v2068_v4, %v2062_v44  ;;  %v233_v6 = vpop.f32.mrb[16].mxu0  ;;  %v346_v8 = vpop.f32.mrb[16].mxu1 }
 0x113   :  { %v235_v7 = vpop.f32.mrb[17].mxu0  ;;  %v2076_v11 = vpop.f32.mrb[17].mxu1 }
 0x114   :  { %v393_v9 = vmax.f32 %v233_v6, %v235_v7  ;;  %v237_v10 = vpop.f32.mrb[18].mxu0  ;;  %v350_v13 = vpop.f32.mrb[18].mxu1 }
 0x115   :  { %v239_v12 = vpop.f32.mrb[19].mxu0  ;;  %v2080_v45 = vpop.f32.mrb[19].mxu1 }
 0x116   :  { %v2078_v14 = vmax.f32 %v393_v9, %v346_v8  ;;  %v394_v15 = vmax.f32 %v237_v10, %v239_v12 }
 0x117   :  { %1688 = vmatmul.mubr.msk.bf16.gmra.mrb[124].mxu0 %vm134_vm0, %v1879_v46  ;;  %1696 = vmatmul.mubr.msk.bf16.gmra.mrb[124].mxu1 %vm134_vm0, %v1879_v46 }
 0x118   :  { %v425_v0 = vmax.f32 %v2078_v14, %v2076_v11  ;;  %v2086_v17 = vmax.f32 %v394_v15, %v350_v13 }
 0x11a   :  { %v426_v18 = vmax.f32 %v2086_v17, %v2080_v45  ;;  %v243_v20 = vpop.f32.mrb[20].mxu0  ;;  %v356_v26 = vpop.f32.mrb[20].mxu1 }
 0x11b   :  { %v245_v25 = vpop.f32.mrb[21].mxu0  ;;  %v2092_v29 = vpop.f32.mrb[21].mxu1 }
 0x11c   :  { %v395_v27 = vmax.f32 %v243_v20, %v245_v25  ;;  %v247_v28 = vpop.f32.mrb[22].mxu0  ;;  %v360_v32 = vpop.f32.mrb[22].mxu1 }
 0x11d   :  { %v249_v31 = vpop.f32.mrb[23].mxu0  ;;  %v2096_v40 = vpop.f32.mrb[23].mxu1 }
 0x11e   :  { %v2094_v34 = vmax.f32 %v395_v27, %v356_v26  ;;  %v396_v39 = vmax.f32 %v247_v28, %v249_v31 }
 0x120   :  { %v427_v46 = vmax.f32 %v2094_v34, %v2092_v29  ;;  %v2100_v41 = vmax.f32 %v396_v39, %v360_v32 }
 0x122   :  { %v428_v42 = vmax.f32 %v2100_v41, %v2096_v40  ;;  %v253_v47 = vpop.f32.mrb[24].mxu0  ;;  %v366_v50 = vpop.f32.mrb[24].mxu1 }
 0x123   :  { %v255_v49 = vpop.f32.mrb[25].mxu0  ;;  %v2104_v57 = vpop.f32.mrb[25].mxu1 }
 0x124   :  { %v397_v52 = vmax.f32 %v253_v47, %v255_v49  ;;  %v257_v56 = vpop.f32.mrb[26].mxu0  ;;  %v370_v59 = vpop.f32.mrb[26].mxu1 }
 0x125   :  { %v259_v58 = vpop.f32.mrb[27].mxu0  ;;  %v2108_v63 = vpop.f32.mrb[27].mxu1 }
 0x126   :  { %v2106_v60 = vmax.f32 %v397_v52, %v366_v50  ;;  %v398_v62 = vmax.f32 %v257_v56, %v259_v58 }
 0x128   :  { %v429_v2 = vmax.f32 %v2106_v60, %v2104_v57  ;;  %v2112_v6 = vmax.f32 %v398_v62, %v370_v59 }
 0x12a   :  { %v430_v7 = vmax.f32 %v2112_v6, %v2108_v63  ;;  %v263_v8 = vpop.f32.mrb[28].mxu0  ;;  %v376_v10 = vpop.f32.mrb[28].mxu1 }
 0x12b   :  { %v265_v9 = vpop.f32.mrb[29].mxu0  ;;  %v2116_v15 = vpop.f32.mrb[29].mxu1 }
 0x12c   :  { %v399_v12 = vmax.f32 %v263_v8, %v265_v9  ;;  %v267_v13 = vpop.f32.mrb[30].mxu0  ;;  %v380_v25 = vpop.f32.mrb[30].mxu1 }
 0x12d   :  { %v269_v20 = vpop.f32.mrb[31].mxu0  ;;  %v2120_v28 = vpop.f32.mrb[31].mxu1 }
 0x12e   :  { %v2118_v26 = vmax.f32 %v399_v12, %v376_v10  ;;  %v400_v27 = vmax.f32 %v267_v13, %v269_v20 }
 0x130   :  { %v2124_v32 = vmax.f32 %v400_v27, %v380_v25 }
 0x132   :  { %v515_v47 = vpop.f32.mrb[32].mxu0  ;;  %v628_v50 = vpop.f32.mrb[32].mxu1 }
 0x133   :  { %v517_v49 = vpop.f32.mrb[33].mxu0  ;;  %v630_v58 = vpop.f32.mrb[33].mxu1 }
 0x134   :  { %v707_v52 = vmax.f32 %v515_v47, %v517_v49  ;;  %v519_v56 = vpop.f32.mrb[34].mxu0  ;;  %v632_v62 = vpop.f32.mrb[34].mxu1 }
 0x135   :  { %v521_v59 = vpop.f32.mrb[35].mxu0  ;;  %v634_v10 = vpop.f32.mrb[35].mxu1 }
 0x136   :  { %v723_v8 = vmax.f32 %v707_v52, %v628_v50  ;;  %v708_v9 = vmax.f32 %v519_v56, %v521_v59 }
 0x138   :  { %v739_v12 = vmax.f32 %v723_v8, %v630_v58  ;;  %v724_v13 = vmax.f32 %v708_v9, %v632_v62 }
 0x13a   :  { %v2131_v20 = vmax.f32 %v417_v22, %v739_v12  ;;  %v740_v25 = vmax.f32 %v724_v13, %v634_v10  ;;  %v525_v27 = vpop.f32.mrb[36].mxu0  ;;  %v638_v31 = vpop.f32.mrb[36].mxu1 }
 0x13b   :  { %v527_v39 = vpop.f32.mrb[37].mxu0  ;;  %v640_v52 = vpop.f32.mrb[37].mxu1 }
 0x13c   :  { %v2136_v47 = vmax.f32 %v418_v24, %v740_v25  ;;  %v709_v49 = vmax.f32 %v525_v27, %v527_v39  ;;  %v529_v50 = vpop.f32.mrb[38].mxu0  ;;  %v642_v58 = vpop.f32.mrb[38].mxu1 }
 0x13d   :  { %v531_v56 = vpop.f32.mrb[39].mxu0  ;;  %v644_v8 = vpop.f32.mrb[39].mxu1 }
 0x13e   :  { %v725_v59 = vmax.f32 %v709_v49, %v638_v31  ;;  %v710_v62 = vmax.f32 %v529_v50, %v531_v56 }
 0x140   :  { %v741_v16 = vmax.f32 %v725_v59, %v640_v52  ;;  %v726_v19 = vmax.f32 %v710_v62, %v642_v58 }
 0x142   :  { %v2141_v22 = vmax.f32 %v419_v36, %v741_v16  ;;  %v742_v9 = vmax.f32 %v726_v19, %v644_v8  ;;  %v535_v10 = vpop.f32.mrb[40].mxu0  ;;  %v648_v23 = vpop.f32.mrb[40].mxu1 }
 0x143   :  { %v537_v21 = vpop.f32.mrb[41].mxu0  ;;  %v650_v12 = vpop.f32.mrb[41].mxu1 }
 0x144   :  { %v2146_v24 = vmax.f32 %v420_v38, %v742_v9  ;;  %v711_v39 = vmax.f32 %v535_v10, %v537_v21  ;;  %v539_v31 = vpop.f32.mrb[42].mxu0  ;;  %v652_v25 = vpop.f32.mrb[42].mxu1 }
 0x145   :  { %v541_v13 = vpop.f32.mrb[43].mxu0  ;;  %v654_v50 = vpop.f32.mrb[43].mxu1 }
 0x146   :  { %v727_v27 = vmax.f32 %v711_v39, %v648_v23  ;;  %v712_v49 = vmax.f32 %v539_v31, %v541_v13 }
 0x148   :  { %v743_v30 = vmax.f32 %v727_v27, %v650_v12  ;;  %v728_v33 = vmax.f32 %v712_v49, %v652_v25 }
 0x14a   :  { %v2151_v36 = vmax.f32 %v421_v53, %v743_v30  ;;  %v744_v52 = vmax.f32 %v728_v33, %v654_v50  ;;  %v545_v56 = vpop.f32.mrb[44].mxu0  ;;  %v658_v37 = vpop.f32.mrb[44].mxu1 }
 0x14b   :  { %v547_v35 = vpop.f32.mrb[45].mxu0  ;;  %v660_v62 = vpop.f32.mrb[45].mxu1 }
 0x14c   :  { %v2156_v38 = vmax.f32 %v422_v55, %v744_v52  ;;  %v713_v58 = vmax.f32 %v545_v56, %v547_v35  ;;  %v549_v59 = vpop.f32.mrb[46].mxu0  ;;  %v662_v16 = vpop.f32.mrb[46].mxu1 }
 0x14d   :  { %v551_v8 = vpop.f32.mrb[47].mxu0  ;;  %v664_v10 = vpop.f32.mrb[47].mxu1 }
 0x14e   :  { %v729_v19 = vmax.f32 %v713_v58, %v658_v37  ;;  %v714_v9 = vmax.f32 %v549_v59, %v551_v8 }
 0x150   :  { %v745_v48 = vmax.f32 %v729_v19, %v660_v62  ;;  %v730_v51 = vmax.f32 %v714_v9, %v662_v16 }
 0x152   :  { %v2161_v53 = vmax.f32 %v423_v3, %v745_v48  ;;  %v746_v21 = vmax.f32 %v730_v51, %v664_v10  ;;  %v555_v23 = vpop.f32.mrb[48].mxu0  ;;  %v668_v54 = vpop.f32.mrb[48].mxu1 }
 0x153   :  { %v557_v43 = vpop.f32.mrb[49].mxu0  ;;  %v670_v12 = vpop.f32.mrb[49].mxu1 }
 0x154   :  { %v2166_v55 = vmax.f32 %v424_v5, %v746_v21  ;;  %v715_v39 = vmax.f32 %v555_v23, %v557_v43  ;;  %v559_v31 = vpop.f32.mrb[50].mxu0  ;;  %v672_v25 = vpop.f32.mrb[50].mxu1 }
 0x155   :  { %v561_v13 = vpop.f32.mrb[51].mxu0  ;;  %v674_v50 = vpop.f32.mrb[51].mxu1 }
 0x156   :  { %v731_v27 = vmax.f32 %v715_v39, %v668_v54  ;;  %v716_v49 = vmax.f32 %v559_v31, %v561_v13 }
 0x158   :  { %v747_v61 = vmax.f32 %v731_v27, %v670_v12  ;;  %v732_v1 = vmax.f32 %v716_v49, %v672_v25 }
 0x15a   :  { %v2171_v3 = vmax.f32 %v425_v0, %v747_v61  ;;  %v748_v30 = vmax.f32 %v732_v1, %v674_v50  ;;  %v565_v33 = vpop.f32.mrb[52].mxu0  ;;  %v678_v4 = vpop.f32.mrb[52].mxu1 }
 0x15b   :  { %v567_v44 = vpop.f32.mrb[53].mxu0  ;;  %v680_v35 = vpop.f32.mrb[53].mxu1 }
 0x15c   :  { %v2176_v5 = vmax.f32 %v426_v18, %v748_v30  ;;  %v717_v52 = vmax.f32 %v565_v33, %v567_v44  ;;  %v569_v56 = vpop.f32.mrb[54].mxu0  ;;  %v682_v58 = vpop.f32.mrb[54].mxu1 }
 0x15d   :  { %v571_v37 = vpop.f32.mrb[55].mxu0  ;;  %v684_v8 = vpop.f32.mrb[55].mxu1 }
 0x15e   :  { %v733_v59 = vmax.f32 %v717_v52, %v678_v4  ;;  %v718_v62 = vmax.f32 %v569_v56, %v571_v37 }
 0x160   :  { %v749_v11 = vmax.f32 %v733_v59, %v680_v35  ;;  %v734_v14 = vmax.f32 %v718_v62, %v682_v58 }
 0x162   :  { %v2181_v0 = vmax.f32 %v427_v46, %v749_v11  ;;  %v750_v16 = vmax.f32 %v734_v14, %v684_v8  ;;  %v575_v19 = vpop.f32.mrb[56].mxu0  ;;  %v688_v17 = vpop.f32.mrb[56].mxu1 }
 0x163   :  { %v577_v45 = vpop.f32.mrb[57].mxu0  ;;  %v690_v48 = vpop.f32.mrb[57].mxu1 }
 0x164   :  { %v2186_v18 = vmax.f32 %v428_v42, %v750_v16  ;;  %v719_v9 = vmax.f32 %v575_v19, %v577_v45  ;;  %v579_v10 = vpop.f32.mrb[58].mxu0  ;;  %v692_v21 = vpop.f32.mrb[58].mxu1 }
 0x165   :  { %v581_v51 = vpop.f32.mrb[59].mxu0  ;;  %v694_v54 = vpop.f32.mrb[59].mxu1 }
 0x166   :  { %v735_v23 = vmax.f32 %v719_v9, %v688_v17  ;;  %v720_v43 = vmax.f32 %v579_v10, %v581_v51 }
 0x168   :  { %v751_v29 = vmax.f32 %v735_v23, %v690_v48  ;;  %v736_v34 = vmax.f32 %v720_v43, %v692_v21 }
 0x16a   :  { %v2191_v46 = vmax.f32 %v429_v2, %v751_v29  ;;  %v752_v39 = vmax.f32 %v736_v34, %v694_v54  ;;  %v585_v31 = vpop.f32.mrb[60].mxu0  ;;  %v698_v41 = vpop.f32.mrb[60].mxu1  ;;  %v2299_v2 = vmax.f32 %v2118_v26, %v2116_v15 }
 0x16b   :  { %v587_v40 = vpop.f32.mrb[61].mxu0  ;;  %v700_v25 = vpop.f32.mrb[61].mxu1 }
 0x16c   :  { %v2196_v42 = vmax.f32 %v430_v7, %v752_v39  ;;  %v721_v12 = vmax.f32 %v585_v31, %v587_v40  ;;  %v589_v13 = vpop.f32.mrb[62].mxu0  ;;  %v702_v49 = vpop.f32.mrb[62].mxu1  ;;  %v2300_v7 = vmax.f32 %v2124_v32, %v2120_v28 }
 0x16d   :  { %v591_v27 = vpop.f32.mrb[63].mxu0  ;;  %v704_v1 = vpop.f32.mrb[63].mxu1 }
 0x16e   :  { %v737_v50 = vmax.f32 %v721_v12, %v698_v41  ;;  %v722_v61 = vmax.f32 %v589_v13, %v591_v27 }
 0x170   :  { %v753_v57 = vmax.f32 %v737_v50, %v700_v25  ;;  %v738_v60 = vmax.f32 %v722_v61, %v702_v49 }
 0x172   :  { %v2201_v30 = vmax.f32 %v2299_v2, %v753_v57  ;;  %v754_v33 = vmax.f32 %v738_v60, %v704_v1  ;;  %v853_v44 = vpop.f32.mrb[64].mxu0  ;;  %v966_v6 = vpop.f32.mrb[64].mxu1 }
 0x173   :  { %v855_v63 = vpop.f32.mrb[65].mxu0  ;;  %v968_v35 = vpop.f32.mrb[65].mxu1 }
 0x174   :  { %v2206_v4 = vmax.f32 %v2300_v7, %v754_v33  ;;  %v1045_v52 = vmax.f32 %v853_v44, %v855_v63  ;;  %v857_v56 = vpop.f32.mrb[66].mxu0  ;;  %v970_v58 = vpop.f32.mrb[66].mxu1 }
 0x175   :  { %v859_v37 = vpop.f32.mrb[67].mxu0  ;;  %v972_v8 = vpop.f32.mrb[67].mxu1 }
 0x176   :  { %v1061_v59 = vmax.f32 %v1045_v52, %v966_v6  ;;  %v1046_v62 = vmax.f32 %v857_v56, %v859_v37 }
 0x178   :  { %v1077_v15 = vmax.f32 %v1061_v59, %v968_v35  ;;  %v1062_v26 = vmax.f32 %v1046_v62, %v970_v58 }
 0x17a   :  { %v2209_v11 = vmax.f32 %v2131_v20, %v1077_v15  ;;  %v1078_v14 = vmax.f32 %v1062_v26, %v972_v8  ;;  %v863_v16 = vpop.f32.mrb[68].mxu0  ;;  %v976_v45 = vpop.f32.mrb[68].mxu1 }
 0x17b   :  { %v865_v19 = vpop.f32.mrb[69].mxu0  ;;  %v978_v9 = vpop.f32.mrb[69].mxu1 }
 0x17c   :  { %v2212_v28 = vmax.f32 %v2136_v47, %v1078_v14  ;;  %v1047_v32 = vmax.f32 %v863_v16, %v865_v19  ;;  %v867_v17 = vpop.f32.mrb[70].mxu0  ;;  %v980_v48 = vpop.f32.mrb[70].mxu1 }
 0x17d   :  { %v869_v10 = vpop.f32.mrb[71].mxu0  ;;  %v982_v23 = vpop.f32.mrb[71].mxu1 }
 0x17e   :  { %v1063_v51 = vmax.f32 %v1047_v32, %v976_v45  ;;  %v1048_v21 = vmax.f32 %v867_v17, %v869_v10 }
 0x180   :  { %v1079_v43 = vmax.f32 %v1063_v51, %v978_v9  ;;  %v1064_v54 = vmax.f32 %v1048_v21, %v980_v48 }
 0x182   :  { %v2215_v20 = vmax.f32 %v2141_v22, %v1079_v43  ;;  %v1080_v29 = vmax.f32 %v1064_v54, %v982_v23  ;;  %v873_v34 = vpop.f32.mrb[72].mxu0  ;;  %v986_v31 = vpop.f32.mrb[72].mxu1 }
 0x183   :  { %v875_v39 = vpop.f32.mrb[73].mxu0  ;;  %v988_v12 = vpop.f32.mrb[73].mxu1 }
 0x184   :  { %v2218_v47 = vmax.f32 %v2146_v24, %v1080_v29  ;;  %v1049_v40 = vmax.f32 %v873_v34, %v875_v39  ;;  %v877_v41 = vpop.f32.mrb[74].mxu0  ;;  %v990_v25 = vpop.f32.mrb[74].mxu1 }
 0x185   :  { %v879_v13 = vpop.f32.mrb[75].mxu0  ;;  %v992_v50 = vpop.f32.mrb[75].mxu1 }
 0x186   :  { %v1065_v27 = vmax.f32 %v1049_v40, %v986_v31  ;;  %v1050_v49 = vmax.f32 %v877_v41, %v879_v13 }
 0x188   :  { %v1081_v61 = vmax.f32 %v1065_v27, %v988_v12  ;;  %v1066_v1 = vmax.f32 %v1050_v49, %v990_v25 }
 0x18a   :  { %v2221_v22 = vmax.f32 %v2151_v36, %v1081_v61  ;;  %v1082_v57 = vmax.f32 %v1066_v1, %v992_v50  ;;  %v883_v60 = vpop.f32.mrb[76].mxu0  ;;  %v996_v33 = vpop.f32.mrb[76].mxu1 }
 0x18b   :  { %v885_v2 = vpop.f32.mrb[77].mxu0  ;;  %v998_v6 = vpop.f32.mrb[77].mxu1 }
 0x18c   :  { %v2224_v24 = vmax.f32 %v2156_v38, %v1082_v57  ;;  %v1051_v44 = vmax.f32 %v883_v60, %v885_v2  ;;  %v887_v63 = vpop.f32.mrb[78].mxu0  ;;  %v1000_v52 = vpop.f32.mrb[78].mxu1 }
 0x18d   :  { %v889_v7 = vpop.f32.mrb[79].mxu0  ;;  %v1002_v37 = vpop.f32.mrb[79].mxu1 }
 0x18e   :  { %v1067_v56 = vmax.f32 %v1051_v44, %v996_v33  ;;  %v1052_v35 = vmax.f32 %v887_v63, %v889_v7 }
 0x190   :  { %v1083_v58 = vmax.f32 %v1067_v56, %v998_v6  ;;  %v1068_v59 = vmax.f32 %v1052_v35, %v1000_v52 }
 0x192   :  { %v2227_v36 = vmax.f32 %v2161_v53, %v1083_v58  ;;  %v1084_v62 = vmax.f32 %v1068_v59, %v1002_v37  ;;  %v893_v8 = vpop.f32.mrb[80].mxu0  ;;  %v1006_v26 = vpop.f32.mrb[80].mxu1 }
 0x193   :  { %v895_v15 = vpop.f32.mrb[81].mxu0  ;;  %v1008_v19 = vpop.f32.mrb[81].mxu1 }
 0x194   :  { %v2230_v38 = vmax.f32 %v2166_v55, %v1084_v62  ;;  %v1053_v14 = vmax.f32 %v893_v8, %v895_v15  ;;  %v897_v16 = vpop.f32.mrb[82].mxu0  ;;  %v1010_v32 = vpop.f32.mrb[82].mxu1 }
 0x195   :  { %v899_v45 = vpop.f32.mrb[83].mxu0  ;;  %v1012_v10 = vpop.f32.mrb[83].mxu1 }
 0x196   :  { %v1069_v17 = vmax.f32 %v1053_v14, %v1006_v26  ;;  %v1054_v9 = vmax.f32 %v897_v16, %v899_v45 }
 0x198   :  { %v1085_v48 = vmax.f32 %v1069_v17, %v1008_v19  ;;  %v1070_v51 = vmax.f32 %v1054_v9, %v1010_v32 }
 0x19a   :  { %v2233_v53 = vmax.f32 %v2171_v3, %v1085_v48  ;;  %v1086_v21 = vmax.f32 %v1070_v51, %v1012_v10  ;;  %v903_v23 = vpop.f32.mrb[84].mxu0  ;;  %v1016_v54 = vpop.f32.mrb[84].mxu1 }
 0x19b   :  { %v905_v43 = vpop.f32.mrb[85].mxu0  ;;  %v1018_v39 = vpop.f32.mrb[85].mxu1 }
 0x19c   :  { %v2236_v55 = vmax.f32 %v2176_v5, %v1086_v21  ;;  %v1055_v29 = vmax.f32 %v903_v23, %v905_v43  ;;  %v907_v34 = vpop.f32.mrb[86].mxu0  ;;  %v1020_v40 = vpop.f32.mrb[86].mxu1 }
 0x19d   :  { %v909_v31 = vpop.f32.mrb[87].mxu0  ;;  %v1022_v13 = vpop.f32.mrb[87].mxu1 }
 0x19e   :  { %v1071_v41 = vmax.f32 %v1055_v29, %v1016_v54  ;;  %v1056_v12 = vmax.f32 %v907_v34, %v909_v31 }
 0x1a0   :  { %v1087_v25 = vmax.f32 %v1071_v41, %v1018_v39  ;;  %v1072_v27 = vmax.f32 %v1056_v12, %v1020_v40 }
 0x1a2   :  { %v2239_v3 = vmax.f32 %v2181_v0, %v1087_v25  ;;  %v1088_v49 = vmax.f32 %v1072_v27, %v1022_v13  ;;  %v913_v50 = vpop.f32.mrb[88].mxu0  ;;  %v1026_v1 = vpop.f32.mrb[88].mxu1 }
 0x1a3   :  { %v915_v61 = vpop.f32.mrb[89].mxu0  ;;  %v1028_v2 = vpop.f32.mrb[89].mxu1 }
 0x1a4   :  { %v2242_v5 = vmax.f32 %v2186_v18, %v1088_v49  ;;  %v1057_v57 = vmax.f32 %v913_v50, %v915_v61  ;;  %v917_v60 = vpop.f32.mrb[90].mxu0  ;;  %v1030_v44 = vpop.f32.mrb[90].mxu1 }
 0x1a5   :  { %v919_v33 = vpop.f32.mrb[91].mxu0  ;;  %v1032_v7 = vpop.f32.mrb[91].mxu1 }
 0x1a6   :  { %v1073_v63 = vmax.f32 %v1057_v57, %v1026_v1  ;;  %v1058_v6 = vmax.f32 %v917_v60, %v919_v33 }
 0x1a8   :  { %v1089_v52 = vmax.f32 %v1073_v63, %v1028_v2  ;;  %v1074_v56 = vmax.f32 %v1058_v6, %v1030_v44 }
 0x1aa   :  { %v2245_v0 = vmax.f32 %v2191_v46, %v1089_v52  ;;  %v1090_v35 = vmax.f32 %v1074_v56, %v1032_v7  ;;  %v923_v37 = vpop.f32.mrb[92].mxu0  ;;  %v1036_v59 = vpop.f32.mrb[92].mxu1 }
 0x1ab   :  { %v925_v58 = vpop.f32.mrb[93].mxu0  ;;  %v1038_v15 = vpop.f32.mrb[93].mxu1 }
 0x1ac   :  { %v2248_v18 = vmax.f32 %v2196_v42, %v1090_v35  ;;  %v1059_v62 = vmax.f32 %v923_v37, %v925_v58  ;;  %v927_v8 = vpop.f32.mrb[94].mxu0  ;;  %v1040_v14 = vpop.f32.mrb[94].mxu1 }
 0x1ad   :  { %v929_v26 = vpop.f32.mrb[95].mxu0  ;;  %v1042_v45 = vpop.f32.mrb[95].mxu1 }
 0x1ae   :  { %v1075_v16 = vmax.f32 %v1059_v62, %v1036_v59  ;;  %v1060_v19 = vmax.f32 %v927_v8, %v929_v26 }
 0x1b0   :  { %v1091_v32 = vmax.f32 %v1075_v16, %v1038_v15  ;;  %v1076_v17 = vmax.f32 %v1060_v19, %v1040_v14 }
 0x1b2   :  { %v2251_v46 = vmax.f32 %v2201_v30, %v1091_v32  ;;  %v1092_v9 = vmax.f32 %v1076_v17, %v1042_v45  ;;  %v1191_v10 = vpop.f32.mrb[96].mxu0  ;;  %v1304_v51 = vpop.f32.mrb[96].mxu1 }
 0x1b3   :  { %v1193_v48 = vpop.f32.mrb[97].mxu0  ;;  %v1306_v43 = vpop.f32.mrb[97].mxu1 }
 0x1b4   :  { %v2254_v42 = vmax.f32 %v2206_v4, %v1092_v9  ;;  %v1383_v21 = vmax.f32 %v1191_v10, %v1193_v48  ;;  %v1195_v23 = vpop.f32.mrb[98].mxu0  ;;  %v1308_v29 = vpop.f32.mrb[98].mxu1 }
 0x1b5   :  { %v1197_v54 = vpop.f32.mrb[99].mxu0  ;;  %v1310_v31 = vpop.f32.mrb[99].mxu1 }
 0x1b6   :  { %v1399_v34 = vmax.f32 %v1383_v21, %v1304_v51  ;;  %v1384_v39 = vmax.f32 %v1195_v23, %v1197_v54 }
 0x1b8   :  { %v1415_v40 = vmax.f32 %v1399_v34, %v1306_v43  ;;  %v1400_v41 = vmax.f32 %v1384_v39, %v1308_v29 }
 0x1ba   :  { %v1431_v30 = vmax.f32 %v2209_v11, %v1415_v40  ;;  %v1416_v12 = vmax.f32 %v1400_v41, %v1310_v31  ;;  %v1201_v13 = vpop.f32.mrb[100].mxu0  ;;  %v1314_v27 = vpop.f32.mrb[100].mxu1 }
 0x1bb   :  { %v1203_v25 = vpop.f32.mrb[101].mxu0  ;;  %v1316_v61 = vpop.f32.mrb[101].mxu1 }
 0x1bc   :  { %v1432_v49 = vmax.f32 %v2212_v28, %v1416_v12  ;;  %v1385_v4 = vmax.f32 %v1201_v13, %v1203_v25  ;;  %v1205_v50 = vpop.f32.mrb[102].mxu0  ;;  %v1318_v57 = vpop.f32.mrb[102].mxu1 }
 0x1bd   :  { %v1207_v1 = vpop.f32.mrb[103].mxu0  ;;  %v1320_v44 = vpop.f32.mrb[103].mxu1 }
 0x1be   :  { %v1447_v60 = vadd.f32 %v1432_v49, %v1431_v30  ;;  %v1401_v2 = vmax.f32 %v1385_v4, %v1314_v27  ;;  %v1386_v33 = vmax.f32 %v1205_v50, %v1207_v1  ;;  %v2262_v27 = vpop.permute.xlu0 %1506 }
 0x1bf   :  { %v1508_v1 = vrot.slane %v2262_v27, 1 }
 0x1c0   :  { %v1448_v63 = vrot.slane %v1447_v60, 4  ;;  %v1417_v6 = vmax.f32 %v1401_v2, %v1316_v61  ;;  %v1402_v7 = vmax.f32 %v1386_v33, %v1318_v57 }
 0x1c2   :  { %v1449_v52 = vadd.f32 %v1448_v63, %v1447_v60  ;;  %v1433_v11 = vmax.f32 %v2215_v20, %v1417_v6  ;;  %v1418_v56 = vmax.f32 %v1402_v7, %v1320_v44  ;;  %v1211_v35 = vpop.f32.mrb[104].mxu0  ;;  %v1324_v58 = vpop.f32.mrb[104].mxu1 }
 0x1c3   :  { %v1213_v37 = vpop.f32.mrb[105].mxu0  ;;  %v1326_v15 = vpop.f32.mrb[105].mxu1 }
 0x1c4   :  { %v1450_v28 = vrot.slane %v1449_v52, 2  ;;  %v1434_v59 = vmax.f32 %v2218_v47, %v1418_v56  ;;  %v1387_v62 = vmax.f32 %v1211_v35, %v1213_v37  ;;  %v1215_v8 = vpop.f32.mrb[106].mxu0  ;;  %v1328_v14 = vpop.f32.mrb[106].mxu1 }
 0x1c5   :  { %v1217_v26 = vpop.f32.mrb[107].mxu0  ;;  %v1330_v17 = vpop.f32.mrb[107].mxu1 }
 0x1c6   :  { %v1451_v16 = vadd.f32 %v1450_v28, %v1449_v52  ;;  %v1454_v19 = vadd.f32 %v1434_v59, %v1433_v11  ;;  %v1403_v45 = vmax.f32 %v1387_v62, %v1324_v58  ;;  %v1388_v32 = vmax.f32 %v1215_v8, %v1217_v26 }
 0x1c8   :  { %v1455_v9 = vrot.slane %v1454_v19, 4  ;;  %v1419_v10 = vmax.f32 %v1403_v45, %v1326_v15  ;;  %v1404_v20 = vmax.f32 %v1388_v32, %v1328_v14  ;;  %v1452_v48 = vrot.slane %v1451_v16, 1 }
 0x1ca   :  { %v1456_v51 = vadd.f32 %v1455_v9, %v1454_v19  ;;  %v1435_v21 = vmax.f32 %v2221_v22, %v1419_v10  ;;  %v1420_v23 = vmax.f32 %v1404_v20, %v1330_v17  ;;  %v1221_v43 = vpop.f32.mrb[108].mxu0  ;;  %v1334_v54 = vpop.f32.mrb[108].mxu1  ;;  %v1453_v41 = vadd.f32 %v1452_v48, %v1451_v16 }
 0x1cb   :  { %v1223_v47 = vpop.f32.mrb[109].mxu0  ;;  %v1336_v40 = vpop.f32.mrb[109].mxu1 }
 0x1cc   :  { %v1457_v29 = vrot.slane %v1456_v51, 2  ;;  %v1436_v34 = vmax.f32 %v2224_v24, %v1420_v23  ;;  %v1389_v39 = vmax.f32 %v1221_v43, %v1223_v47  ;;  %v1225_v31 = vpop.f32.mrb[110].mxu0  ;;  %v1338_v12 = vpop.f32.mrb[110].mxu1  ;;  %v1523_v24 = vmul.f32 %v2262_v27, %v1453_v41 }
 0x1cd   :  { %v1227_v30 = vpop.f32.mrb[111].mxu0  ;;  %v1340_v4 = vpop.f32.mrb[111].mxu1 }
 0x1ce   :  { %v1458_v13 = vadd.f32 %v1457_v29, %v1456_v51  ;;  %v1461_v25 = vadd.f32 %v1436_v34, %v1435_v21  ;;  %v1405_v49 = vmax.f32 %v1389_v39, %v1334_v54  ;;  %v1390_v22 = vmax.f32 %v1225_v31, %v1227_v30 }
 0x1cf   :  { %v1531_v28 = vmax.f32 %v1523_v24, 0.0 }
 0x1d0   :  { %v1459_v50 = vrot.slane %v1458_v13, 1  ;;  %v1462_v61 = vrot.slane %v1461_v25, 4  ;;  %v1421_v57 = vmax.f32 %v1405_v49, %v1336_v40  ;;  %v1406_v60 = vmax.f32 %v1390_v22, %v1338_v12 }
 0x1d1   :  { %v1539_v20 = vmin.f32 %v1531_v28, 1.0 }
 0x1d2   :  { %v1460_v2 = vadd.f32 %v1459_v50, %v1458_v13  ;;  %v1463_v33 = vadd.f32 %v1462_v61, %v1461_v25  ;;  %v1437_v44 = vmax.f32 %v2227_v36, %v1421_v57  ;;  %v1231_v63 = vpop.f32.mrb[112].mxu0  ;;  %v1422_v6 = vmax.f32 %v1406_v60, %v1340_v4  ;;  %v1344_v52 = vpop.f32.mrb[112].mxu1 }
 0x1d3   :  { %v1233_v7 = vpop.f32.mrb[113].mxu0  ;;  %v1346_v58 = vpop.f32.mrb[113].mxu1  ;;  %v1509_v36 = vrot.slane %v2262_v27, 2 }
 0x1d4   :  { %v1464_v11 = vrot.slane %v1463_v33, 2  ;;  %v1524_v56 = vmul.f32 %v1508_v1, %v1460_v2  ;;  %v1391_v35 = vmax.f32 %v1231_v63, %v1233_v7  ;;  %v1235_v37 = vpop.f32.mrb[114].mxu0  ;;  %v1438_v59 = vmax.f32 %v2230_v38, %v1422_v6  ;;  %v1348_v8 = vpop.f32.mrb[114].mxu1 }
 0x1d5   :  { %v1237_v62 = vpop.f32.mrb[115].mxu0  ;;  %v1350_v19 = vpop.f32.mrb[115].mxu1 }
 0x1d6   :  { %v1465_v15 = vadd.f32 %v1464_v11, %v1463_v33  ;;  %v1532_v26 = vmax.f32 %v1524_v56, 0.0  ;;  %v1407_v14 = vmax.f32 %v1391_v35, %v1344_v52  ;;  %v1392_v16 = vmax.f32 %v1235_v37, %v1237_v62 }
 0x1d7   :  { %v1468_v45 = vadd.f32 %v1438_v59, %v1437_v44 }
 0x1d8   :  { %v1466_v32 = vrot.slane %v1465_v15, 1  ;;  %v1540_v17 = vmin.f32 %v1532_v26, 1.0  ;;  %v1423_v9 = vmax.f32 %v1407_v14, %v1346_v58  ;;  %v1408_v10 = vmax.f32 %v1392_v16, %v1348_v8 }
 0x1d9   :  { %v1469_v48 = vrot.slane %v1468_v45, 4 }
 0x1da   :  { %v1467_v51 = vadd.f32 %v1466_v32, %v1465_v15  ;;  %v1555_v21 = vrot.slane %v1540_v17, 7  ;;  %v1439_v38 = vmax.f32 %v2233_v53, %v1423_v9  ;;  %v1424_v23 = vmax.f32 %v1408_v10, %v1350_v19  ;;  %v1241_v43 = vpop.f32.mrb[116].mxu0  ;;  %v1354_v29 = vpop.f32.mrb[116].mxu1 }
 0x1db   :  { %v1470_v47 = vadd.f32 %v1469_v48, %v1468_v45  ;;  %v1243_v54 = vpop.f32.mrb[117].mxu0  ;;  %v1356_v41 = vpop.f32.mrb[117].mxu1  ;;  %v1511_v32 = vrot.slane %v2262_v27, 4 }
 0x1dc   :  { %v1525_v34 = vmul.f32 %v1509_v36, %v1467_v51  ;;  %v1440_v39 = vmax.f32 %v2236_v55, %v1424_v23  ;;  %v1393_v31 = vmax.f32 %v1241_v43, %v1243_v54  ;;  %v1245_v40 = vpop.f32.mrb[118].mxu0  ;;  %v1557_v30 = vsel %vm1556_vm1, %v1555_v21, %v1539_v20  ;;  %v1358_v25 = vpop.f32.mrb[118].mxu1 }
 0x1dd   :  { %v1471_v12 = vrot.slane %v1470_v47, 2  ;;  %v1247_v13 = vpop.f32.mrb[119].mxu0  ;;  %v1360_v53 = vpop.f32.mrb[119].mxu1  ;;  %v1510_v55 = vrot.slane %v2262_v27, 3 }
 0x1de   :  { %v1533_v49 = vmax.f32 %v1525_v34, 0.0  ;;  %v1475_v4 = vadd.f32 %v1440_v39, %v1439_v38  ;;  %v1409_v22 = vmax.f32 %v1393_v31, %v1354_v29  ;;  %v1394_v50 = vmax.f32 %v1245_v40, %v1247_v13 }
 0x1df   :  { %v1472_v61 = vadd.f32 %v1471_v12, %v1470_v47 }
 0x1e0   :  { %v1541_v1 = vmin.f32 %v1533_v49, 1.0  ;;  %v1476_v57 = vrot.slane %v1475_v4, 4  ;;  %v1425_v24 = vmax.f32 %v1409_v22, %v1356_v41  ;;  %v1410_v60 = vmax.f32 %v1394_v50, %v1358_v25 }
 0x1e1   :  { %v1473_v2 = vrot.slane %v1472_v61, 1  ;;  %v1512_v50 = vrot.slane %v2262_v27, 5 }
 0x1e2   :  { %v1477_v33 = vadd.f32 %v1476_v57, %v1475_v4  ;;  %v1441_v44 = vmax.f32 %v2239_v3, %v1425_v24  ;;  %v1426_v63 = vmax.f32 %v1410_v60, %v1360_v53  ;;  %v1251_v6 = vpop.f32.mrb[120].mxu0  ;;  %v1558_v7 = vrot.slane %v1541_v1, 6  ;;  %v1364_v56 = vpop.f32.mrb[120].mxu1 }
 0x1e3   :  { %v1474_v52 = vadd.f32 %v1473_v2, %v1472_v61  ;;  %v1253_v11 = vpop.f32.mrb[121].mxu0  ;;  %v1366_v59 = vpop.f32.mrb[121].mxu1 }
 0x1e4   :  { %v1478_v35 = vrot.slane %v1477_v33, 2  ;;  %v1442_v37 = vmax.f32 %v2242_v5, %v1426_v63  ;;  %v1395_v58 = vmax.f32 %v1251_v6, %v1253_v11  ;;  %v1255_v28 = vpop.f32.mrb[122].mxu0  ;;  %v1560_v62 = vsel %vm1559_vm2, %v1558_v7, %v1557_v30  ;;  %v1368_v26 = vpop.f32.mrb[122].mxu1 }
 0x1e5   :  { %v1526_v8 = vmul.f32 %v1510_v55, %v1474_v52  ;;  %v1257_v15 = vpop.f32.mrb[123].mxu0  ;;  %v1370_v36 = vpop.f32.mrb[123].mxu1 }
 0x1e6   :  { %v1479_v14 = vadd.f32 %v1478_v35, %v1477_v33  ;;  %v1482_v16 = vadd.f32 %v1442_v37, %v1441_v44  ;;  %v1411_v19 = vmax.f32 %v1395_v58, %v1364_v56  ;;  %v1396_v3 = vmax.f32 %v1255_v28, %v1257_v15 }
 0x1e7   :  { %v1534_v45 = vmax.f32 %v1526_v8, 0.0  ;;  %v1513_v58 = vrot.slane %v2262_v27, 6 }
 0x1e8   :  { %v1480_v17 = vrot.slane %v1479_v14, 1  ;;  %v1483_v9 = vrot.slane %v1482_v16, 4  ;;  %v1427_v10 = vmax.f32 %v1411_v19, %v1366_v59  ;;  %v1412_v20 = vmax.f32 %v1396_v3, %v1368_v26 }
 0x1e9   :  { %v1542_v5 = vmin.f32 %v1534_v45, 1.0 }
 0x1ea   :  { %v1481_v48 = vadd.f32 %v1480_v17, %v1479_v14  ;;  %v1484_v51 = vadd.f32 %v1483_v9, %v1482_v16  ;;  %v1443_v21 = vmax.f32 %v2245_v0, %v1427_v10  ;;  %v1428_v38 = vmax.f32 %v1412_v20, %v1370_v36  ;;  %v1261_v23 = vpop.f32.mrb[124].mxu0  ;;  %v1374_v54 = vpop.f32.mrb[124].mxu1 }
 0x1eb   :  { %v1561_v43 = vrot.slane %v1542_v5, 5  ;;  %v1263_v47 = vpop.f32.mrb[125].mxu0  ;;  %v1376_v41 = vpop.f32.mrb[125].mxu1 }
 0x1ec   :  { %v1527_v29 = vmul.f32 %v1511_v32, %v1481_v48  ;;  %v1485_v34 = vrot.slane %v1484_v51, 2  ;;  %v1444_v39 = vmax.f32 %v2248_v18, %v1428_v38  ;;  %v1397_v31 = vmax.f32 %v1261_v23, %v1263_v47  ;;  %v1265_v40 = vpop.f32.mrb[126].mxu0  ;;  %v1378_v12 = vpop.f32.mrb[126].mxu1 }
 0x1ed   :  { %v1267_v30 = vpop.f32.mrb[127].mxu0  ;;  %v1563_v13 = vsel %vm1562_vm3, %v1561_v43, %v1560_v62  ;;  %v1380_v22 = vpop.f32.mrb[127].mxu1  ;;  %v1514_v32 = vrot.slane %v2262_v27, 7 }
 0x1ee   :  { %v1535_v25 = vmax.f32 %v1527_v29, 0.0  ;;  %v1486_v49 = vadd.f32 %v1485_v34, %v1484_v51  ;;  %v1489_v4 = vadd.f32 %v1444_v39, %v1443_v21  ;;  %v1413_v0 = vmax.f32 %v1397_v31, %v1374_v54 }
 0x1ef   :  { %v1398_v53 = vmax.f32 %v1265_v40, %v1267_v30 }
 0x1f0   :  { %v1543_v61 = vmin.f32 %v1535_v25, 1.0  ;;  %v1487_v1 = vrot.slane %v1486_v49, 1  ;;  %v1490_v57 = vrot.slane %v1489_v4, 4  ;;  %v1429_v24 = vmax.f32 %v1413_v0, %v1376_v41 }
 0x1f1   :  { %v1414_v18 = vmax.f32 %v1398_v53, %v1378_v12 }
 0x1f2   :  { %v1488_v60 = vadd.f32 %v1487_v1, %v1486_v49  ;;  %v1491_v2 = vadd.f32 %v1490_v57, %v1489_v4  ;;  %v1445_v55 = vmax.f32 %v2251_v46, %v1429_v24  ;;  %v1564_v33 = vrot.slane %v1543_v61, 4 }
 0x1f3   :  { %v1430_v44 = vmax.f32 %v1414_v18, %v1380_v22 }
 0x1f4   :  { %v1528_v63 = vmul.f32 %v1512_v50, %v1488_v60  ;;  %v1492_v6 = vrot.slane %v1491_v2, 2  ;;  %v1566_v7 = vsel %vm1565_vm4, %v1564_v33, %v1563_v13 }
 0x1f5   :  { %v1446_v52 = vmax.f32 %v2254_v42, %v1430_v44 }
 0x1f6   :  { %v1493_v11 = vadd.f32 %v1492_v6, %v1491_v2  ;;  %v1536_v56 = vmax.f32 %v1528_v63, 0.0 }
 0x1f7   :  { %v1496_v35 = vadd.f32 %v1446_v52, %v1445_v55 }
 0x1f8   :  { %v1494_v37 = vrot.slane %v1493_v11, 1  ;;  %v1544_v28 = vmin.f32 %v1536_v56, 1.0 }
 0x1f9   :  { %v1497_v59 = vrot.slane %v1496_v35, 4 }
 0x1fa   :  { %v1495_v62 = vadd.f32 %v1494_v37, %v1493_v11  ;;  %v1567_v8 = vrot.slane %v1544_v28, 3 }
 0x1fb   :  { %v1498_v15 = vadd.f32 %v1497_v59, %v1496_v35 }
 0x1fc   :  { %v1529_v46 = vmul.f32 %v1513_v58, %v1495_v62  ;;  %v1569_v26 = vsel %vm1568_vm5, %v1567_v8, %v1566_v7 }
 0x1fd   :  { %v1499_v14 = vrot.slane %v1498_v15, 2 }
 0x1fe   :  { %v1537_v16 = vmax.f32 %v1529_v46, 0.0 }
 0x1ff   :  { %v1500_v19 = vadd.f32 %v1499_v14, %v1498_v15 }
 0x200   :  { %v1545_v3 = vmin.f32 %v1537_v16, 1.0 }
 0x201   :  { %v1501_v36 = vrot.slane %v1500_v19, 1 }
 0x202   :  { %v1570_v42 = vrot.slane %v1545_v3, 2 }
 0x203   :  { %v1502_v45 = vadd.f32 %v1501_v36, %v1500_v19 }
 0x204   :  { %v1572_v17 = vsel %vm1571_vm6, %v1570_v42, %v1569_v26 }
 0x205   :  { %v1530_v9 = vmul.f32 %v1514_v32, %v1502_v45 }
 0x207   :  { %v1538_v10 = vmax.f32 %v1530_v9, 0.0 }
 0x209   :  { %v1546_v20 = vmin.f32 %v1538_v10, 1.0 }
 0x20b   :  { %v1573_v5 = vrot.slane %v1546_v20, 1 }
 0x20d   :  { %v1575_v48 = vsel %vm1574_vm7, %v1573_v5, %v1572_v17 }
 0x20e   :  { %1577 = vst [vmem:[#allocation5] sm:$0xff] %v1575_v48 }
 0x20f   :  { %1744 = shalt.err (!%p1741_p12)
}
 0x210   :  { %s1745_s19 = scalar_lea.hbm %s2298_s3, 128 }
 0x211   :  { %p1746_p13 = scmp.ne.s32.totalorder %s2298_s3, %s1745_s19  ;;  %p1749_p0 = scmp.lt.u32.totalorder %s1745_s19, %s2298_s3 }
 0x213   :  { %p1751_p1 = pnand %p1749_p0, %p1746_p13 }
 0x215   :  { %1754 = shalt.err (!%p1751_p1)
}
 0x216   :  { %1587 = dma.vmem_to_hbm [thread:$0]  %s1585_s15, 128, %s2298_s3, [#allocation4]  }
 0x217   :  { %1757 = dma.done.wait [#allocation4], 128  }
 0x218   :  { %1758 = vsyncadd [#allocation4], 4294967168 }
 0x219   :  { %1591 = vsyncpa [#allocation3], 1 }
 0x21a   :  { %1592 = vsyncpa [#allocation4], 1 }

</bundles_post_ra>
